<compile_context>
chip_gen: v7x
topology: tpu7x:2x2x1
jax: 0.10.0
libtpu: 0.0.40
codegen_flags: <defaults>
</compile_context>

<pallas_src>
import jax
import jax.numpy as jnp
import numpy as np
from jax.experimental import pallas as pl
from jax.experimental.pallas import tpu as pltpu


# ------------------------------ fused kernel --------------------------------

def _fused_net_kernel(x_ref, t1_ref, t2_ref, wf1_ref, wf2_ref,
                      b1_ref, b2_ref, bf1_ref, bf2_ref,
                      s1_ref, s2_ref, out_ref):
    bf16 = jnp.bfloat16

    def mm(a, b):
        return jnp.dot(a, b, preferred_element_type=jnp.float32)

    x = x_ref[0]                          # (TB*28, 28) f32; row = (image, h), col = w
    r1 = x.shape[0] - 4                   # conv1 output rows (incl. cross-image
                                          # garbage rows, never selected below)

    # ---- conv1: 5 row-shifted taps K-concatenated -> ONE matmul (K=140, N=256)
    xc = jnp.concatenate([x[di:di + r1, :] for di in range(5)], axis=1).astype(bf16)
    z1 = mm(xc, t1_ref[...])                                    # (r1, 256) f32
    # 2x2 max-pool, width half: parity blocks are 128-lane-aligned slices
    zw1 = jnp.maximum(z1[:, 0:128], z1[:, 128:256])             # (r1, 128)
    # height half: shifted-slice pair-max, then ONE 0/1 row-compaction matmul
    p1 = jnp.maximum(zw1[0:r1 - 1, :], zw1[1:r1, :]).astype(bf16)
    a1 = jnp.maximum(mm(s1_ref[...], p1) + b1_ref[...], 0.0)    # (TB*12, 128), cols=(w12, c10)
    # TODO(synk): Dropout2d is identity in eval mode; training-mode channel dropout
    # (pltpu.prng_random_bits) is not implemented.

    # ---- conv2: same scheme (K = 5*128 = 640, lane-aligned concat)
    r2 = a1.shape[0] - 4
    a1c = jnp.concatenate([a1[di:di + r2, :] for di in range(5)], axis=1).astype(bf16)
    z2 = mm(a1c, t2_ref[...])                                   # (r2, 256) f32
    zw2 = jnp.maximum(z2[:, 0:128], z2[:, 128:256])             # (r2, 128)
    p2 = jnp.maximum(zw2[0:r2 - 1, :], zw2[1:r2, :]).astype(bf16)

    # ---- fused conv2 row-compaction + NCHW flatten: 4 pooled-row selections,
    # concatenated along lanes -> (TB, 512) with col = io2*128 + jo2*20 + c2
    a2 = jnp.concatenate([mm(s2_ref[io2], p2) for io2 in range(4)], axis=1)
    a2 = jnp.maximum(a2 + b2_ref[...], 0.0)
    # TODO(synk): F.dropout is identity in eval mode; not implemented for training.

    # ---- fc1 -> fc2 -> log_softmax (only this (TB, 10) block leaves VMEM)
    h = jnp.maximum(mm(a2.astype(bf16), wf1_ref[...]) + bf1_ref[...], 0.0)   # (TB, 50)
    logits = mm(h.astype(bf16), wf2_ref[...]) + bf2_ref[...]                 # (TB, 10)
    m = jnp.max(logits, axis=-1, keepdims=True)
    lse = jnp.log(jnp.sum(jnp.exp(logits - m), axis=-1, keepdims=True)) + m
    out_ref[0] = logits - lse


# --------------------------- host-side weight prep ---------------------------

def _choose_tile(batch):
    """Batch tile TB and padded batch Bp (keeps >= 2 grid steps when batch >= 2)."""
    if batch >= 16:
        tb = 8
    else:
        tb = max(1, batch // 2)
    bp = ((batch + tb - 1) // tb) * tb
    return bp, tb


def prepare_params(params, tile_b):
    """One-time repack of PyTorch-layout weights into kernel layouts (numpy)."""
    w1 = np.asarray(params["conv1_w"], np.float32)   # (10, 1, 5, 5)
    b1 = np.asarray(params["conv1_b"], np.float32)
    w2 = np.asarray(params["conv2_w"], np.float32)   # (20, 10, 5, 5)
    b2 = np.asarray(params["conv2_b"], np.float32)
    wf1 = np.asarray(params["fc1_w"], np.float32)    # (50, 320), feat = c2*16 + h*4 + w
    bf1 = np.asarray(params["fc1_b"], np.float32)
    wf2 = np.asarray(params["fc2_w"], np.float32)    # (10, 50)
    bf2 = np.asarray(params["fc2_b"], np.float32)

    # conv1 Toeplitz, taps stacked along K, parity blocks 128-lane aligned:
    #   T1[di*28 + m, jp*128 + jo*10 + ch] = w1[ch, 0, di, m - (2*jo + jp)]
    t1 = np.zeros((5 * 28, 256), np.float32)
    for di in range(5):
        for jp in range(2):
            for jo in range(12):
                for dj in range(5):
                    m = 2 * jo + jp + dj
                    col = jp * 128 + jo * 10
                    t1[di * 28 + m, col:col + 10] = w1[:, 0, di, dj]

    # conv2 Toeplitz: T2[di*128 + j1*10 + c1, jp*128 + jo*20 + c2] = w2[c2, c1, di, j1-(2jo+jp)]
    t2 = np.zeros((5 * 128, 256), np.float32)
    for di in range(5):
        for jp in range(2):
            for jo in range(4):
                for dj in range(5):
                    j1 = 2 * jo + jp + dj
                    row = di * 128 + j1 * 10
                    col = jp * 128 + jo * 20
                    t2[row:row + 10, col:col + 20] = w2[:, :, di, dj].T

    # fc1 with the NCHW flatten folded in:
    #   Wf1[io2*128 + jo2*20 + c2, n] = fc1_w[n, c2*16 + io2*4 + jo2]
    wfc1 = np.zeros((512, 50), np.float32)
    for io2 in range(4):
        for jo2 in range(4):
            for c2 in range(20):
                wfc1[io2 * 128 + jo2 * 20 + c2, :] = wf1[:, c2 * 16 + io2 * 4 + jo2]
    wfc2 = np.ascontiguousarray(wf2.T)               # (50, 10): MXU-friendly (K, N)

    # per-column bias rows (bias added post-pool, pre-relu: max(a+b, c+b) = max(a,c)+b)
    b1_row = np.zeros((1, 128), np.float32)
    for jo in range(12):
        b1_row[0, jo * 10:jo * 10 + 10] = b1
    b2_row = np.zeros((1, 512), np.float32)
    for io2 in range(4):
        for jo2 in range(4):
            b2_row[0, io2 * 128 + jo2 * 20:io2 * 128 + jo2 * 20 + 20] = b2
    bf1_row = bf1[None, :]
    bf2_row = bf2[None, :]

    # 0/1 row-compaction matrices (one per pool stage; the height pair-max is done
    # with shifted slices in-kernel, so only the even row of each pooled pair is picked)
    tb = tile_b
    r1, r2 = tb * 28 - 4, tb * 12 - 4
    s1 = np.zeros((tb * 12, r1 - 1), np.float32)
    for b in range(tb):
        for io in range(12):
            s1[b * 12 + io, b * 28 + 2 * io] = 1.0
    s2 = np.zeros((4, tb, r2 - 1), np.float32)
    for io2 in range(4):
        for b in range(tb):
            s2[io2, b, b * 12 + 2 * io2] = 1.0

    as_bf16 = {"T1": t1, "T2": t2, "Wf1": wfc1, "Wf2": wfc2, "S1": s1, "S2": s2}
    as_f32 = {"b1": b1_row, "b2": b2_row, "bf1": bf1_row, "bf2": bf2_row}
    out = {k: jnp.asarray(v, jnp.bfloat16) for k, v in as_bf16.items()}
    out.update({k: jnp.asarray(v, jnp.float32) for k, v in as_f32.items()})
    return out


# ------------------------------- forward pass --------------------------------

def net_forward(prepped, x):
    """x: (B, 1, 28, 28) float32 NCHW. Returns (B, 10) log-probabilities."""
    B = x.shape[0]
    TB = prepped["S2"].shape[1]
    Bp = ((B + TB - 1) // TB) * TB
    steps = Bp // TB
    r1, r2 = TB * 28 - 4, TB * 12 - 4

    # Free relayout: rows = (image, h), cols = w.  Padded images are zeros; their
    # garbage log-softmax rows are discarded via the [:B] slice below (do not read them).
    x3 = x.reshape(B, 28, 28).astype(jnp.float32)
    if Bp != B:
        x3 = jnp.concatenate([x3, jnp.zeros((Bp - B, 28, 28), jnp.float32)], axis=0)
    xg = x3.reshape(steps, TB * 28, 28)

    operands = (xg, prepped["T1"], prepped["T2"], prepped["Wf1"], prepped["Wf2"],
                prepped["b1"], prepped["b2"], prepped["bf1"], prepped["bf2"],
                prepped["S1"], prepped["S2"])

    macs = steps * (r1 * 140 * 256 + (TB * 12) * (r1 - 1) * 128
                    + r2 * 640 * 256 + 4 * TB * (r2 - 1) * 128
                    + TB * 512 * 50 + TB * 50 * 10)
    bytes_accessed = int(sum(int(o.size) * o.dtype.itemsize for o in operands)
                         + Bp * 10 * 4)

    out = pl.pallas_call(
        _fused_net_kernel,
        out_shape=jax.ShapeDtypeStruct((steps, TB, 10), jnp.float32),
        grid_spec=pltpu.PrefetchScalarGridSpec(
            num_scalar_prefetch=0,
            grid=(steps,),
            in_specs=[
                pl.BlockSpec((1, TB * 28, 28), lambda i: (i, 0, 0)),   # x (batch-tiled)
                pl.BlockSpec((140, 256), lambda i: (0, 0)),            # T1 (grid-invariant)
                pl.BlockSpec((640, 256), lambda i: (0, 0)),            # T2
                pl.BlockSpec((512, 50), lambda i: (0, 0)),             # Wf1
                pl.BlockSpec((50, 10), lambda i: (0, 0)),              # Wf2
                pl.BlockSpec((1, 128), lambda i: (0, 0)),              # b1
                pl.BlockSpec((1, 512), lambda i: (0, 0)),              # b2
                pl.BlockSpec((1, 50), lambda i: (0, 0)),               # bf1
                pl.BlockSpec((1, 10), lambda i: (0, 0)),               # bf2
                pl.BlockSpec((TB * 12, r1 - 1), lambda i: (0, 0)),     # S1
                pl.BlockSpec((4, TB, r2 - 1), lambda i: (0, 0, 0)),    # S2
            ],
            out_specs=pl.BlockSpec((1, TB, 10), lambda i: (i, 0, 0)),
        ),
        compiler_params=pltpu.CompilerParams(
            dimension_semantics=("parallel",),
            vmem_limit_bytes=32 * 1024 * 1024,
        ),
        cost_estimate=pl.CostEstimate(
            flops=int(2 * macs),
            transcendentals=int(Bp * 11),
            bytes_accessed=bytes_accessed,
        ),
    )(*operands)
    return out.reshape(Bp, 10)[:B]


# ---------------------------- params & reference -----------------------------

def init_params(key):
    ks = jax.random.split(key, 8)

    def u(k, shape, fan_in):
        bound = 1.0 / jnp.sqrt(jnp.float32(fan_in))
        return jax.random.uniform(k, shape, jnp.float32, -bound, bound)

    return {
        "conv1_w": u(ks[0], (10, 1, 5, 5), 1 * 5 * 5),
        "conv1_b": u(ks[1], (10,), 1 * 5 * 5),
        "conv2_w": u(ks[2], (20, 10, 5, 5), 10 * 5 * 5),
        "conv2_b": u(ks[3], (20,), 10 * 5 * 5),
        "fc1_w": u(ks[4], (50, 320), 320),
        "fc1_b": u(ks[5], (50,), 320),
        "fc2_w": u(ks[6], (10, 50), 50),
        "fc2_b": u(ks[7], (10,), 50),
    }


def reference_forward(params, x):
    """Plain-XLA f32 (HIGHEST precision) reference matching the PyTorch module (eval)."""
    prec = jax.lax.Precision.HIGHEST

    def conv(z, w, b):
        y = jax.lax.conv_general_dilated(
            z, w, window_strides=(1, 1), padding="VALID",
            dimension_numbers=("NCHW", "OIHW", "NCHW"), precision=prec)
        return y + b[None, :, None, None]

    def pool_relu(z):
        b, c, hh, ww = z.shape
        z = z.reshape(b, c, hh // 2, 2, ww // 2, 2).max(axis=(3, 5))
        return jax.nn.relu(z)

    h = pool_relu(conv(x, params["conv1_w"], params["conv1_b"]))
    h = pool_relu(conv(h, params["conv2_w"], params["conv2_b"]))
    h = h.reshape(h.shape[0], 320)
    h = jax.nn.relu(jnp.dot(h, params["fc1_w"].T, precision=prec) + params["fc1_b"])
    logits = jnp.dot(h, params["fc2_w"].T, precision=prec) + params["fc2_b"]
    return jax.nn.log_softmax(logits, axis=-1)


# ----------------------------------- demo ------------------------------------

if __name__ == "__main__":
    key = jax.random.PRNGKey(0)
    pkey, xkey = jax.random.split(key)
    params = init_params(pkey)
    # batch=2, single-channel 28x28 (required so the flatten yields 320 features)
    x = jax.random.normal(xkey, (2, 1, 28, 28), dtype=jnp.float32)

    _, tile_b = _choose_tile(x.shape[0])
    prepped = prepare_params(params, tile_b)          # one-time host-side repack

    out = jax.block_until_ready(jax.jit(net_forward)(prepped, x))

    assert out.shape == (2, 10)
    # rows of log_softmax must exponentiate-and-sum to 1
    assert bool(jnp.allclose(jnp.exp(out).sum(axis=1), 1.0, atol=1e-4))

    # cross-check against the f32 HIGHEST-precision XLA reference (kernel matmuls
    # are bf16-operand / f32-accumulate, so a few-1e-3 logit delta is expected)
    ref = jax.block_until_ready(jax.jit(reference_forward)(params, x))
    assert bool(jnp.allclose(out, ref, atol=5e-2, rtol=5e-2))

    print("KERNEL_OK")
</pallas_src>

<mosaic_0001>
module attributes {stable_mosaic.version = 11 : i64} {
  func.func @_fused_net_kernel(%arg0: i32, %arg1: memref<1x28x28xf32, #tpu.memory_space<vmem>>, %arg2: memref<140x256xbf16, #tpu.memory_space<vmem>>, %arg3: memref<640x256xbf16, #tpu.memory_space<vmem>>, %arg4: memref<512x50xbf16, #tpu.memory_space<vmem>>, %arg5: memref<50x10xbf16, #tpu.memory_space<vmem>>, %arg6: memref<1x128xf32, #tpu.memory_space<vmem>>, %arg7: memref<1x512xf32, #tpu.memory_space<vmem>>, %arg8: memref<1x50xf32, #tpu.memory_space<vmem>>, %arg9: memref<1x10xf32, #tpu.memory_space<vmem>>, %arg10: memref<12x23xbf16, #tpu.memory_space<vmem>>, %arg11: memref<4x1x7xbf16, #tpu.memory_space<vmem>>, %arg12: memref<1x1x10xf32, #tpu.memory_space<vmem>>) attributes {dimension_semantics = [#tpu.dimension_semantics<parallel>], iteration_bounds = array<i64: 2>, scalar_prefetch = 0 : i64, scratch_operands = 0 : i64, tpu.core_type = #tpu.core_type<tc>, window_params = [{transform_indices = @transform_0, window_bounds = array<i64: 1, 28, 28>}, {pipeline_mode = #tpu.pipeline_mode<synchronous>, transform_indices = @transform_1, window_bounds = array<i64: 140, 256>}, {pipeline_mode = #tpu.pipeline_mode<synchronous>, transform_indices = @transform_2, window_bounds = array<i64: 640, 256>}, {pipeline_mode = #tpu.pipeline_mode<synchronous>, transform_indices = @transform_3, window_bounds = array<i64: 512, 50>}, {pipeline_mode = #tpu.pipeline_mode<synchronous>, transform_indices = @transform_4, window_bounds = array<i64: 50, 10>}, {pipeline_mode = #tpu.pipeline_mode<synchronous>, transform_indices = @transform_5, window_bounds = array<i64: 1, 128>}, {pipeline_mode = #tpu.pipeline_mode<synchronous>, transform_indices = @transform_6, window_bounds = array<i64: 1, 512>}, {pipeline_mode = #tpu.pipeline_mode<synchronous>, transform_indices = @transform_7, window_bounds = array<i64: 1, 50>}, {pipeline_mode = #tpu.pipeline_mode<synchronous>, transform_indices = @transform_8, window_bounds = array<i64: 1, 10>}, {pipeline_mode = #tpu.pipeline_mode<synchronous>, transform_indices = @transform_9, window_bounds = array<i64: 12, 23>}, {pipeline_mode = #tpu.pipeline_mode<synchronous>, transform_indices = @transform_10, window_bounds = array<i64: 4, 1, 7>}, {transform_indices = @transform_11, window_bounds = array<i64: 1, 1, 10>}]} {
    %c0 = arith.constant 0 : index
    %c0_0 = arith.constant 0 : index
    %c0_1 = arith.constant 0 : index
    %0 = vector.load %arg1[%c0, %c0_0, %c0_1] : memref<1x28x28xf32, #tpu.memory_space<vmem>>, vector<1x28x28xf32>
    %1 = vector.shape_cast %0 : vector<1x28x28xf32> to vector<28x28xf32>
    %2 = vector.extract_strided_slice %1 {offsets = [0, 0], sizes = [24, 28], strides = [1, 1]} : vector<28x28xf32> to vector<24x28xf32>
    %3 = vector.extract_strided_slice %1 {offsets = [1, 0], sizes = [24, 28], strides = [1, 1]} : vector<28x28xf32> to vector<24x28xf32>
    %4 = vector.extract_strided_slice %1 {offsets = [2, 0], sizes = [24, 28], strides = [1, 1]} : vector<28x28xf32> to vector<24x28xf32>
    %5 = vector.extract_strided_slice %1 {offsets = [3, 0], sizes = [24, 28], strides = [1, 1]} : vector<28x28xf32> to vector<24x28xf32>
    %6 = vector.extract_strided_slice %1 {offsets = [4, 0], sizes = [24, 28], strides = [1, 1]} : vector<28x28xf32> to vector<24x28xf32>
    %7 = tpu.concatenate %2, %3, %4, %5, %6 in 1 : vector<24x28xf32>, vector<24x28xf32>, vector<24x28xf32>, vector<24x28xf32>, vector<24x28xf32> -> vector<24x140xf32>
    %8 = arith.truncf %7 : vector<24x140xf32> to vector<24x140xbf16>
    %c0_2 = arith.constant 0 : index
    %c0_3 = arith.constant 0 : index
    %9 = vector.load %arg2[%c0_2, %c0_3] : memref<140x256xbf16, #tpu.memory_space<vmem>>, vector<140x256xbf16>
    %cst = arith.constant dense<0.000000e+00> : vector<24x256xf32>
    %10 = tpu.matmul %8, %9, %cst {dimension_numbers = #tpu.dot_dimension_numbers<[1], [0], [0], [1], [0, 0, 1, 1], [], []>} : vector<24x140xbf16>, vector<140x256xbf16>, vector<24x256xf32> -> vector<24x256xf32>
    %11 = vector.extract_strided_slice %10 {offsets = [0, 0], sizes = [24, 128], strides = [1, 1]} : vector<24x256xf32> to vector<24x128xf32>
    %12 = vector.extract_strided_slice %10 {offsets = [0, 128], sizes = [24, 128], strides = [1, 1]} : vector<24x256xf32> to vector<24x128xf32>
    %13 = arith.maximumf %11, %12 : vector<24x128xf32>
    %14 = vector.extract_strided_slice %13 {offsets = [0, 0], sizes = [23, 128], strides = [1, 1]} : vector<24x128xf32> to vector<23x128xf32>
    %15 = vector.extract_strided_slice %13 {offsets = [1, 0], sizes = [23, 128], strides = [1, 1]} : vector<24x128xf32> to vector<23x128xf32>
    %16 = arith.maximumf %14, %15 : vector<23x128xf32>
    %17 = arith.truncf %16 : vector<23x128xf32> to vector<23x128xbf16>
    %c0_4 = arith.constant 0 : index
    %c0_5 = arith.constant 0 : index
    %18 = vector.load %arg10[%c0_4, %c0_5] : memref<12x23xbf16, #tpu.memory_space<vmem>>, vector<12x23xbf16>
    %cst_6 = arith.constant dense<0.000000e+00> : vector<12x128xf32>
    %19 = tpu.matmul %18, %17, %cst_6 {dimension_numbers = #tpu.dot_dimension_numbers<[1], [0], [0], [1], [0, 0, 1, 1], [], []>} : vector<12x23xbf16>, vector<23x128xbf16>, vector<12x128xf32> -> vector<12x128xf32>
    %c0_7 = arith.constant 0 : index
    %c0_8 = arith.constant 0 : index
    %20 = vector.load %arg6[%c0_7, %c0_8] : memref<1x128xf32, #tpu.memory_space<vmem>>, vector<1x128xf32>
    %21 = vector.broadcast %20 : vector<1x128xf32> to vector<12x128xf32>
    %22 = arith.addf %19, %21 : vector<12x128xf32>
    %cst_9 = arith.constant 0.000000e+00 : f32
    %23 = vector.broadcast %cst_9 : f32 to vector<12x128xf32>
    %24 = arith.maximumf %22, %23 : vector<12x128xf32>
    %25 = vector.extract_strided_slice %24 {offsets = [0, 0], sizes = [8, 128], strides = [1, 1]} : vector<12x128xf32> to vector<8x128xf32>
    %26 = vector.extract_strided_slice %24 {offsets = [1, 0], sizes = [8, 128], strides = [1, 1]} : vector<12x128xf32> to vector<8x128xf32>
    %27 = vector.extract_strided_slice %24 {offsets = [2, 0], sizes = [8, 128], strides = [1, 1]} : vector<12x128xf32> to vector<8x128xf32>
    %28 = vector.extract_strided_slice %24 {offsets = [3, 0], sizes = [8, 128], strides = [1, 1]} : vector<12x128xf32> to vector<8x128xf32>
    %29 = vector.extract_strided_slice %24 {offsets = [4, 0], sizes = [8, 128], strides = [1, 1]} : vector<12x128xf32> to vector<8x128xf32>
    %30 = tpu.concatenate %25, %26, %27, %28, %29 in 1 : vector<8x128xf32>, vector<8x128xf32>, vector<8x128xf32>, vector<8x128xf32>, vector<8x128xf32> -> vector<8x640xf32>
    %31 = arith.truncf %30 : vector<8x640xf32> to vector<8x640xbf16>
    %c0_10 = arith.constant 0 : index
    %c0_11 = arith.constant 0 : index
    %32 = vector.load %arg3[%c0_10, %c0_11] : memref<640x256xbf16, #tpu.memory_space<vmem>>, vector<640x256xbf16>
    %cst_12 = arith.constant dense<0.000000e+00> : vector<8x256xf32>
    %33 = tpu.matmul %31, %32, %cst_12 {dimension_numbers = #tpu.dot_dimension_numbers<[1], [0], [0], [1], [0, 0, 1, 1], [], []>} : vector<8x640xbf16>, vector<640x256xbf16>, vector<8x256xf32> -> vector<8x256xf32>
    %34 = vector.extract_strided_slice %33 {offsets = [0, 0], sizes = [8, 128], strides = [1, 1]} : vector<8x256xf32> to vector<8x128xf32>
    %35 = vector.extract_strided_slice %33 {offsets = [0, 128], sizes = [8, 128], strides = [1, 1]} : vector<8x256xf32> to vector<8x128xf32>
    %36 = arith.maximumf %34, %35 : vector<8x128xf32>
    %37 = vector.extract_strided_slice %36 {offsets = [0, 0], sizes = [7, 128], strides = [1, 1]} : vector<8x128xf32> to vector<7x128xf32>
    %38 = vector.extract_strided_slice %36 {offsets = [1, 0], sizes = [7, 128], strides = [1, 1]} : vector<8x128xf32> to vector<7x128xf32>
    %39 = arith.maximumf %37, %38 : vector<7x128xf32>
    %40 = arith.truncf %39 : vector<7x128xf32> to vector<7x128xbf16>
    %c0_13 = arith.constant 0 : index
    %c0_14 = arith.constant 0 : index
    %c0_15 = arith.constant 0 : index
    %41 = vector.load %arg11[%c0_13, %c0_14, %c0_15] : memref<4x1x7xbf16, #tpu.memory_space<vmem>>, vector<1x1x7xbf16>
    %42 = vector.shape_cast %41 : vector<1x1x7xbf16> to vector<1x7xbf16>
    %cst_16 = arith.constant dense<0.000000e+00> : vector<1x128xf32>
    %43 = tpu.matmul %42, %40, %cst_16 {dimension_numbers = #tpu.dot_dimension_numbers<[1], [0], [0], [1], [0, 0, 1, 1], [], []>} : vector<1x7xbf16>, vector<7x128xbf16>, vector<1x128xf32> -> vector<1x128xf32>
    %c1 = arith.constant 1 : index
    %c0_17 = arith.constant 0 : index
    %c0_18 = arith.constant 0 : index
    %44 = vector.load %arg11[%c1, %c0_17, %c0_18] : memref<4x1x7xbf16, #tpu.memory_space<vmem>>, vector<1x1x7xbf16>
    %45 = vector.shape_cast %44 : vector<1x1x7xbf16> to vector<1x7xbf16>
    %cst_19 = arith.constant dense<0.000000e+00> : vector<1x128xf32>
    %46 = tpu.matmul %45, %40, %cst_19 {dimension_numbers = #tpu.dot_dimension_numbers<[1], [0], [0], [1], [0, 0, 1, 1], [], []>} : vector<1x7xbf16>, vector<7x128xbf16>, vector<1x128xf32> -> vector<1x128xf32>
    %c2 = arith.constant 2 : index
    %c0_20 = arith.constant 0 : index
    %c0_21 = arith.constant 0 : index
    %47 = vector.load %arg11[%c2, %c0_20, %c0_21] : memref<4x1x7xbf16, #tpu.memory_space<vmem>>, vector<1x1x7xbf16>
    %48 = vector.shape_cast %47 : vector<1x1x7xbf16> to vector<1x7xbf16>
    %cst_22 = arith.constant dense<0.000000e+00> : vector<1x128xf32>
    %49 = tpu.matmul %48, %40, %cst_22 {dimension_numbers = #tpu.dot_dimension_numbers<[1], [0], [0], [1], [0, 0, 1, 1], [], []>} : vector<1x7xbf16>, vector<7x128xbf16>, vector<1x128xf32> -> vector<1x128xf32>
    %c3 = arith.constant 3 : index
    %c0_23 = arith.constant 0 : index
    %c0_24 = arith.constant 0 : index
    %50 = vector.load %arg11[%c3, %c0_23, %c0_24] : memref<4x1x7xbf16, #tpu.memory_space<vmem>>, vector<1x1x7xbf16>
    %51 = vector.shape_cast %50 : vector<1x1x7xbf16> to vector<1x7xbf16>
    %cst_25 = arith.constant dense<0.000000e+00> : vector<1x128xf32>
    %52 = tpu.matmul %51, %40, %cst_25 {dimension_numbers = #tpu.dot_dimension_numbers<[1], [0], [0], [1], [0, 0, 1, 1], [], []>} : vector<1x7xbf16>, vector<7x128xbf16>, vector<1x128xf32> -> vector<1x128xf32>
    %53 = tpu.concatenate %43, %46, %49, %52 in 1 : vector<1x128xf32>, vector<1x128xf32>, vector<1x128xf32>, vector<1x128xf32> -> vector<1x512xf32>
    %c0_26 = arith.constant 0 : index
    %c0_27 = arith.constant 0 : index
    %54 = vector.load %arg7[%c0_26, %c0_27] : memref<1x512xf32, #tpu.memory_space<vmem>>, vector<1x512xf32>
    %55 = arith.addf %53, %54 : vector<1x512xf32>
    %cst_28 = arith.constant 0.000000e+00 : f32
    %56 = vector.broadcast %cst_28 : f32 to vector<1x512xf32>
    %57 = arith.maximumf %55, %56 : vector<1x512xf32>
    %58 = arith.truncf %57 : vector<1x512xf32> to vector<1x512xbf16>
    %c0_29 = arith.constant 0 : index
    %c0_30 = arith.constant 0 : index
    %59 = vector.load %arg4[%c0_29, %c0_30] : memref<512x50xbf16, #tpu.memory_space<vmem>>, vector<512x50xbf16>
    %cst_31 = arith.constant dense<0.000000e+00> : vector<1x50xf32>
    %60 = tpu.matmul %58, %59, %cst_31 {dimension_numbers = #tpu.dot_dimension_numbers<[1], [0], [0], [1], [0, 0, 1, 1], [], []>} : vector<1x512xbf16>, vector<512x50xbf16>, vector<1x50xf32> -> vector<1x50xf32>
    %c0_32 = arith.constant 0 : index
    %c0_33 = arith.constant 0 : index
    %61 = vector.load %arg8[%c0_32, %c0_33] : memref<1x50xf32, #tpu.memory_space<vmem>>, vector<1x50xf32>
    %62 = arith.addf %60, %61 : vector<1x50xf32>
    %cst_34 = arith.constant 0.000000e+00 : f32
    %63 = vector.broadcast %cst_34 : f32 to vector<1x50xf32>
    %64 = arith.maximumf %62, %63 : vector<1x50xf32>
    %65 = arith.truncf %64 : vector<1x50xf32> to vector<1x50xbf16>
    %c0_35 = arith.constant 0 : index
    %c0_36 = arith.constant 0 : index
    %66 = vector.load %arg5[%c0_35, %c0_36] : memref<50x10xbf16, #tpu.memory_space<vmem>>, vector<50x10xbf16>
    %cst_37 = arith.constant dense<0.000000e+00> : vector<1x10xf32>
    %67 = tpu.matmul %65, %66, %cst_37 {dimension_numbers = #tpu.dot_dimension_numbers<[1], [0], [0], [1], [0, 0, 1, 1], [], []>} : vector<1x50xbf16>, vector<50x10xbf16>, vector<1x10xf32> -> vector<1x10xf32>
    %c0_38 = arith.constant 0 : index
    %c0_39 = arith.constant 0 : index
    %68 = vector.load %arg9[%c0_38, %c0_39] : memref<1x10xf32, #tpu.memory_space<vmem>>, vector<1x10xf32>
    %69 = arith.addf %67, %68 : vector<1x10xf32>
    %cst_40 = arith.constant dense<0xFF800000> : vector<1xf32>
    %70 = vector.multi_reduction <maximumf>, %69, %cst_40 [1] : vector<1x10xf32> to vector<1xf32>
    %71 = vector.shape_cast %70 : vector<1xf32> to vector<1x1xf32>
    %72 = vector.broadcast %71 : vector<1x1xf32> to vector<1x10xf32>
    %73 = arith.subf %69, %72 : vector<1x10xf32>
    %74 = math.exp %73 : vector<1x10xf32>
    %cst_41 = arith.constant dense<0.000000e+00> : vector<1xf32>
    %75 = vector.multi_reduction <add>, %74, %cst_41 [1] : vector<1x10xf32> to vector<1xf32>
    %76 = vector.shape_cast %75 : vector<1xf32> to vector<1x1xf32>
    %77 = math.log %76 : vector<1x1xf32>
    %78 = arith.addf %77, %71 : vector<1x1xf32>
    %79 = vector.broadcast %78 : vector<1x1xf32> to vector<1x10xf32>
    %80 = arith.subf %69, %79 : vector<1x10xf32>
    %c0_42 = arith.constant 0 : index
    %c0_43 = arith.constant 0 : index
    %c0_44 = arith.constant 0 : index
    %81 = vector.load %arg12[%c0_42, %c0_43, %c0_44] : memref<1x1x10xf32, #tpu.memory_space<vmem>>, vector<1x1x10xf32>
    %82 = vector.shape_cast %81 : vector<1x1x10xf32> to vector<1x10xf32>
    %83 = vector.shape_cast %80 : vector<1x10xf32> to vector<1x1x10xf32>
    tpu.vector_store %arg12[%c0_42, %c0_43, %c0_44], %83 {strides = array<i32>} : memref<1x1x10xf32, #tpu.memory_space<vmem>>, vector<1x1x10xf32>,
    return
  }
  func.func @transform_0(%arg0: i32) -> (i32, i32, i32) {
    %c0_i32 = arith.constant 0 : i32
    %c0_i32_0 = arith.constant 0 : i32
    %c0_i32_1 = arith.constant 0 : i32
    return %arg0, %c0_i32, %c0_i32_0 : i32, i32, i32
  }
  func.func @transform_1(%arg0: i32) -> (i32, i32) {
    %c0_i32 = arith.constant 0 : i32
    %c0_i32_0 = arith.constant 0 : i32
    %c0_i32_1 = arith.constant 0 : i32
    return %c0_i32, %c0_i32_0 : i32, i32
  }
  func.func @transform_2(%arg0: i32) -> (i32, i32) {
    %c0_i32 = arith.constant 0 : i32
    %c0_i32_0 = arith.constant 0 : i32
    %c0_i32_1 = arith.constant 0 : i32
    return %c0_i32, %c0_i32_0 : i32, i32
  }
  func.func @transform_3(%arg0: i32) -> (i32, i32) {
    %c0_i32 = arith.constant 0 : i32
    %c0_i32_0 = arith.constant 0 : i32
    %c0_i32_1 = arith.constant 0 : i32
    return %c0_i32, %c0_i32_0 : i32, i32
  }
  func.func @transform_4(%arg0: i32) -> (i32, i32) {
    %c0_i32 = arith.constant 0 : i32
    %c0_i32_0 = arith.constant 0 : i32
    %c0_i32_1 = arith.constant 0 : i32
    return %c0_i32, %c0_i32_0 : i32, i32
  }
  func.func @transform_5(%arg0: i32) -> (i32, i32) {
    %c0_i32 = arith.constant 0 : i32
    %c0_i32_0 = arith.constant 0 : i32
    %c0_i32_1 = arith.constant 0 : i32
    return %c0_i32, %c0_i32_0 : i32, i32
  }
  func.func @transform_6(%arg0: i32) -> (i32, i32) {
    %c0_i32 = arith.constant 0 : i32
    %c0_i32_0 = arith.constant 0 : i32
    %c0_i32_1 = arith.constant 0 : i32
    return %c0_i32, %c0_i32_0 : i32, i32
  }
  func.func @transform_7(%arg0: i32) -> (i32, i32) {
    %c0_i32 = arith.constant 0 : i32
    %c0_i32_0 = arith.constant 0 : i32
    %c0_i32_1 = arith.constant 0 : i32
    return %c0_i32, %c0_i32_0 : i32, i32
  }
  func.func @transform_8(%arg0: i32) -> (i32, i32) {
    %c0_i32 = arith.constant 0 : i32
    %c0_i32_0 = arith.constant 0 : i32
    %c0_i32_1 = arith.constant 0 : i32
    return %c0_i32, %c0_i32_0 : i32, i32
  }
  func.func @transform_9(%arg0: i32) -> (i32, i32) {
    %c0_i32 = arith.constant 0 : i32
    %c0_i32_0 = arith.constant 0 : i32
    %c0_i32_1 = arith.constant 0 : i32
    return %c0_i32, %c0_i32_0 : i32, i32
  }
  func.func @transform_10(%arg0: i32) -> (i32, i32, i32) {
    %c0_i32 = arith.constant 0 : i32
    %c0_i32_0 = arith.constant 0 : i32
    %c0_i32_1 = arith.constant 0 : i32
    %c0_i32_2 = arith.constant 0 : i32
    return %c0_i32, %c0_i32_0, %c0_i32_1 : i32, i32, i32
  }
  func.func @transform_11(%arg0: i32) -> (i32, i32, i32) {
    %c0_i32 = arith.constant 0 : i32
    %c0_i32_0 = arith.constant 0 : i32
    %c0_i32_1 = arith.constant 0 : i32
    return %arg0, %c0_i32, %c0_i32_0 : i32, i32, i32
  }
}

</mosaic_0001>

<bundles_post_ra>
// kernel: net_forward.1
= control target key start
LH: loop header
LB: loop body
LE: loop exit
PB: predicated region body
PF: predicated region fallthrough
CT: control target
= control target key end

     0   :  { %16 = vsyncpa [#allocation3], 0  ;;  %s3532_s0 = inlined_call_operand.vmem [shape: f32[2,28,28], index: 0, kind: input, shape index: {}]   ;;  %s3533_s1 = inlined_call_operand.hbm [shape: bf16[140,256], index: 1, kind: input, shape index: {}]   ;;  %s3534_s2 = inlined_call_operand.vmem [shape: bf16[640,256], index: 2, kind: input, shape index: {}]   ;;  %s3535_s3 = inlined_call_operand.vmem [shape: bf16[512,50], index: 3, kind: input, shape index: {}]   ;;  %s3536_s4 = inlined_call_operand.vmem [shape: bf16[50,10], index: 4, kind: input, shape index: {}]   ;;  %s3537_s5 = inlined_call_operand.hbm [shape: f32[1,128], index: 5, kind: input, shape index: {}]   ;;  %s3538_s6 = inlined_call_operand.vmem [shape: f32[1,512], index: 6, kind: input, shape index: {}]   ;;  %s3539_s7 = inlined_call_operand.vmem [shape: f32[1,50], index: 7, kind: input, shape index: {}]   ;;  %s3540_s8 = inlined_call_operand.vmem [shape: f32[1,10], index: 8, kind: input, shape index: {}]   ;;  %s3541_s9 = inlined_call_operand.vmem [shape: bf16[12,23], index: 9, kind: input, shape index: {}]   ;;  %s3542_s10 = inlined_call_operand.vmem [shape: bf16[4,1,7], index: 10, kind: input, shape index: {}]   ;;  %s3543_s11 = inlined_call_operand.hbm [shape: f32[2,1,10], index: 11, kind: output, shape index: {}]  }
   0x1   :  { %17 = vsyncpa [#allocation6], 0 }
   0x2   :  { %18 = vsyncpa [#allocation4], 0 }
   0x3   :  { %20 = vsyncpa [#allocation4 + $0x1], 0  ;;  %s2888_s17 = smov 0   ;;  %s2890_s18 = smov 0  }
   0x4   :  { %s2892_s19 = smov 0   ;;  %s2894_s20 = smov 0  }
   0x5 LB: > { %3552 = sst [smem:[#allocation11_spill]] %s2801_s17  ;;  %s2909_s21 = sadd.s32 4294967295, %s2813_s20   ;;  %s2813_s20 = sphi %s2894_s20, %s3570_s20   ;;  %s2809_s19 = sphi %s2892_s19, %s3572_s19   ;;  %s2805_s18 = sphi %s2890_s18, %s3574_s18   ;;  %s2801_s17 = sphi %s2888_s17, %s3573_s17  }
   0x6   : > { %3553 = sst [smem:[#allocation12_spill]] %s2809_s19  ;;  %s2135_s22 = sadd.s32 4294967294, %s2813_s20  }
   0x7   : > { %s2913_s23 = sadd.s32 1, %s2813_s20   ;;  %s269_s24 = sadd.s32 1, %s2809_s19 }
   0x8   : > { %3554 = sst [smem:[#allocation13_spill]] %s2913_s23  ;;  %s266_s25 = ssub.s32 %s2813_s20, %s2913_s23 }
   0x9   : > { %p279_p0 = scmp.ne.s32.totalorder %s2809_s19, %s2805_s18  ;;  %p267_p1 = scmp.eq.s32.totalorder %s266_s25, 0 }
   0xa   : > { %p280_p2 = scmp.eq.s32.totalorder %s2909_s21, 1  ;;  %p285_p3 = scmp.ne.s32.totalorder %s2805_s18, %s2801_s17 }
   0xb   : > { %p286_p4 = scmp.eq.s32.totalorder %s2135_s22, 1  ;;  %p2136_p7 = scmp.ge.s32.totalorder %s2813_s20, 1 }
   0xc   : > { %s2924_s26 = scalar_select %p267_p1, %s2809_s19, %s269_s24  }
   0xd   : > { %p2926_p5 = por %p280_p2, %p279_p0  ;;  %p2930_p6 = por %p286_p4, %p285_p3 }
   0xe   : > { %3555 = sst [smem:[#allocation14_spill]] %s2924_s26  ;;  %p293_p8 = scmp.lt.s32.totalorder %s2813_s20, 3 }
   0xf   : > { %s3556_s27 = scalar_select %p2926_p5, 1, 0 }
  0x10   : > { %s3557_s28 = scalar_select %p2930_p6, 1, 0 }
  0x11   : > { %p3545_p9 = scmp.eq.s32.totalorder %s2909_s21, 0  ;;  %p2937_p10 = pnand %p2136_p7, %p293_p8 }
  0x12   : > { %3558 = sst [smem:[#allocation15_spill]] %s3557_s28  ;;  %s2815_s30 = smov [#allocation2]  }
  0x13   : > { %s3559_s29 = scalar_select %p2937_p10, 1, 0 }
  0x14   : > { %s305_s12 = sshll.u32 %s2815_s30, 4  ;;  %p2419_p11 = pneg %p2937_p10  ;;  %s306_s12 = int_to_ptr.vmem [resolvable:$true] %s305_s12 }
  0x15   : > { %s2816_s14 = smov [#allocation5]   ;;  %s2687_s24 = scalar_lea.hbm %s3533_s1, 2304 }
  0x16   : > { %p2945_p12 = pnand %p3545_p9, %p2419_p11  ;;  %s328_s15 = sshll.u32 %s2816_s14, 4  ;;  %s2949_s15 = int_to_ptr.vmem [resolvable:$true] %s328_s15 }
  0x17   : > { %p2688_p13 = scmp.ne.s32.totalorder %s3533_s1, %s2687_s24  ;;  %p2694_p3 = scmp.lt.u32.totalorder %s2687_s24, %s3533_s1 }
  0x18   : > { %p2689_p0 = pneg %p2945_p12 }
  0x1a   : > { %p2690_p1 = pnand %p2689_p0, %p2688_p13 }
  0x1c   : > { %p2691_p2 = pneg %p2690_p1 }
  0x1e   : > { %p2696_p4 = pnand %p2694_p3, %p2691_p2 }
  0x20   : > { %2699 = shalt.err (!%p2696_p4)
}
  0x21   : > { %s2700_s14 = scalar_lea.vmem %s306_s12, 2304  ;;  %p2708_p9 = scmp.lt.s32.totalorder %s306_s12, %s306_s12 }
  0x22   : > { %p2701_p7 = scmp.ne.s32.totalorder %s306_s12, %s2700_s14  ;;  %p2709_p6 = scmp.lt.s32.totalorder %s2700_s14, %s2700_s14 }
  0x24   : > { %p2703_p8 = pnand %p2701_p7, %p2689_p0  ;;  %p2710_p5 = por %p2709_p6, %p2708_p9 }
  0x26   : > { %p2704_p11 = pneg %p2703_p8 }
  0x28   : > { %p2711_p10 = pnand %p2710_p5, %p2704_p11 }
  0x2a   : > { %2714 = shalt.err (!%p2711_p10)
}
  0x2b   : > { %s2817_s16 = smov 128   ;;  %s2818_s22 = smov 8  }
  0x2c   : > { %2422 = dma.hbm_to_vmem [thread:$0]  (!%p2945_p12), %s3533_s1, 2304, %s306_s12, [#allocation3], %s2817_s16, %s2817_s16, %s2818_s22  }
  0x2d   : > { %s2715_s30 = scalar_lea.hbm %s3537_s5, 16 }
  0x2e   : > { %p2716_p13 = scmp.ne.s32.totalorder %s3537_s5, %s2715_s30  ;;  %p2722_p9 = scmp.lt.u32.totalorder %s2715_s30, %s3537_s5 }
  0x30   : > { %p2718_p5 = pnand %p2716_p13, %p2689_p0 }
  0x32   : > { %p2719_p6 = pneg %p2718_p5 }
  0x34   : > { %p2724_p10 = pnand %p2722_p9, %p2719_p6 }
  0x36   : > { %2727 = shalt.err (!%p2724_p10)
}
  0x37   : > { %s2728_s12 = scalar_lea.vmem %s2949_s15, 16  ;;  %s2735_s23 = scalar_lea.vmem %s2949_s15, 32 }
  0x38   : > { %p2729_p1 = scmp.ne.s32.totalorder %s2949_s15, %s2728_s12  ;;  %p2736_p4 = scmp.lt.s32.totalorder %s2949_s15, %s2949_s15 }
  0x39   : > { %p2737_p7 = scmp.lt.s32.totalorder %s2735_s23, %s2728_s12 }
  0x3a   : > { %p2731_p2 = pnand %p2729_p1, %p2689_p0 }
  0x3b   : > { %p2738_p8 = por %p2737_p7, %p2736_p4 }
  0x3c   : > { %p2732_p3 = pneg %p2731_p2 }
  0x3e   : > { %p2739_p11 = pnand %p2738_p8, %p2732_p3 }
  0x40   : > { %2742 = shalt.err (!%p2739_p11)
}
  0x41   : > { %2425 = dma.hbm_to_vmem [thread:$0]  (!%p2945_p12), %s3537_s5, 16, %s2949_s15, [#allocation6]  }
  0x42   : > { %p3561_p13 = scmp.ne.s32.totalorder %s3559_s29, 0 }
  0x43   : > { %p3562_p0 = scmp.eq.s32.totalorder (!%p3561_p13), %s2909_s21, 0 }
  0x44   : > { %364 = sbr.rel (%p3561_p13) target bundleno = 2026 (0x7ea), region = 64 }
  0x4b   : > { %2788 = dma.done.wait (%p3562_p0), [#allocation3], 2304   ;;  %p3563_p5 = pmov %p3562_p0 }
  0x4c   : > { %p3564_p6 = pmov %p3562_p0 }
  0x4d   : > { %2790 = vsyncadd (%p3563_p5), [#allocation3], 4294964992 }
  0x4e   : > { %2792 = dma.done.wait (%p3564_p6), [#allocation6], 16   ;;  %p3565_p9 = pmov %p3562_p0 }
  0x4f   : > { %p407_p10 = scmp.lt.s32.totalorder %s2909_s21, 1  ;;  %vm421_vm0 = vcmask 1046528   ;;  %vm455_vm1 = vcmask 1044480   ;;  %vm438_vm2 = vcmask 1045504   ;;  %vm472_vm3 = vcmask 1043456   ;;  %s2819_s19 = smov 28  }
  0x50   : > { %2794 = vsyncadd (%p3565_p9), [#allocation6], 4294967280  ;;  %v2499_v16 = vld [vmem:[#allocation2 + $0x4] ss:$8 sps:$4 sm:$0xff]   ;;  %v2501_v17 = vld [vmem:[#allocation2] ss:$8 sps:$4 sm:$0xff]  }
  0x51   : > { %s408_s13 = scalar_select %p407_p10, %s2909_s21, 1  ;;  %v2502_v22 = vld [vmem:[#allocation2 + $0x14] ss:$8 sps:$4 sm:$0xff]   ;;  %628 = vmatprep.subr.bf16.mxu0 %v2499_v16  ;;  %v2504_v28 = vld [vmem:[#allocation2 + $0x10] ss:$8 sps:$4 sm:$0xff]   ;;  %vm489_vm4 = vcmask 228352  }
  0x52   : > { %629 = vmatpush1.bf16.msra.mxu0 %v2501_v17  ;;  %s2820_s26 = smov 84   ;;  %v2505_v32 = vld [vmem:[#allocation2 + $0x24] ss:$8 sps:$4 sm:$0xff]   ;;  %s2821_s24 = smov 56   ;;  %v2507_v35 = vld [vmem:[#allocation2 + $0x20] ss:$8 sps:$4 sm:$0xff]  }
  0x53   : > { %s2296_s15 = sshll.u32 %s408_s13, 5  ;;  %630 = vmatprep.subr.bf16.mxu0 %v2502_v22  ;;  %s2822_s25 = smov 112   ;;  %v2508_v38 = vld [vmem:[#allocation2 + $0x34] ss:$8 sps:$4 sm:$0xff]   ;;  %v2510_v41 = vld [vmem:[#allocation2 + $0x30] ss:$8 sps:$4 sm:$0xff]  }
  0x54   : > { %s411_s22 = scalar_lea.vmem %s3532_s0, %s2296_s15  ;;  %v2511_v43 = vld [vmem:[#allocation2 + $0x44] ss:$8 sps:$4 sm:$0xff]   ;;  %v2513_v45 = vld [vmem:[#allocation2 + $0x40] ss:$8 sps:$4 sm:$0xff]   ;;  %v2514_v46 = vld [vmem:[#allocation2 + $0x54] ss:$8 sps:$4 sm:$0xff]  }
  0x55   : > { %v3014_v0 = vld [vmem:[%s411_s22] sm:$0xff]  ;;  %v3016_v1 = vld [vmem:[%s411_s22 + $0x8] sm:$0xff]  ;;  %v3018_v2 = vld [vmem:[%s411_s22 + $0x10] sm:$0xff]  ;;  %vm493_vm5 = vcmask 457728   ;;  %vm497_vm6 = vcmask 687104   ;;  %vm501_vm7 = vcmask 916480  }
  0x56   : > { %v422_v3 = vrot.slane %v3014_v0, 1  ;;  %v423_v4 = vrot.slane %v3016_v1, 1  ;;  %v425_v5 = vrot.slane %v3018_v2, 1  ;;  %v456_v6 = vrot.slane %v3014_v0, 3  ;;  %v416_v11 = vld [vmem:[%s411_s22 + $0x18] sm:$0xf]  ;;  %631 = vmatpush1.bf16.msra.mxu0 %v2504_v28 }
  0x57   : > { %v457_v7 = vrot.slane %v3016_v1, 3  ;;  %v459_v8 = vrot.slane %v3018_v2, 3  ;;  %v439_v9 = vrot.slane %v3014_v0, 2  ;;  %v440_v10 = vrot.slane %v3016_v1, 2  ;;  %632 = vmatprep.subr.bf16.mxu0 %v2505_v32  ;;  %v2516_v47 = vld [vmem:[#allocation2 + $0x50] ss:$8 sps:$4 sm:$0xff]  }
  0x58   : > { %v424_v12 = vsel %vm421_vm0, %v422_v3, %v423_v4  ;;  %v426_v13 = vsel %vm421_vm0, %v423_v4, %v425_v5  ;;  %v442_v14 = vrot.slane %v3018_v2, 2  ;;  %v473_v15 = vrot.slane %v3014_v0, 4  ;;  %v2517_v48 = vld [vmem:[#allocation2 + $0x64] ss:$8 sps:$4 sm:$0xff]   ;;  %v2519_v49 = vld [vmem:[#allocation2 + $0x60] ss:$8 sps:$4 sm:$0xff]  }
  0x59   : > { %v2479_v18 = vpack.i.bf16 %v426_v13, %v424_v12  ;;  %v458_v19 = vsel %vm455_vm1, %v456_v6, %v457_v7  ;;  %v460_v20 = vsel %vm455_vm1, %v457_v7, %v459_v8  ;;  %v441_v21 = vsel %vm438_vm2, %v439_v9, %v440_v10  ;;  %v2520_v50 = vld [vmem:[#allocation2 + $0x74] ss:$8 sps:$4 sm:$0xff]   ;;  %v2522_v51 = vld [vmem:[#allocation2 + $0x70] ss:$8 sps:$4 sm:$0xff]   ;;  %v2533_v28 = vld [vmem:[%s3534_s2 + $0x24] ss:$8 sps:$4 sm:$0xff]  }
  0x5a   : > { %v2489_v23 = vpack.i.bf16 %v460_v20, %v458_v19  ;;  %v443_v24 = vsel %vm438_vm2, %v440_v10, %v442_v14  ;;  %v474_v25 = vrot.slane %v3016_v1, 4  ;;  %v476_v26 = vrot.slane %v3018_v2, 4  ;;  %633 = vmatpush1.bf16.msra.mxu0 %v2507_v35  ;;  %v2523_v52 = vld [vmem:[#allocation2 + $0x84] ss:$8 sps:$4 sm:$0x3f]   ;;  %s405_s16 = sand.u32 1, %s2805_s18  }
  0x5b   : > { %2480 = vrot.lane.b32.xlu0 %v2479_v18, %s2819_s19  ;;  %v2484_v27 = vpack.i.bf16 %v443_v24, %v441_v21  ;;  %v427_v31 = vrot.slane %v416_v11, 1  ;;  %v444_v34 = vrot.slane %v416_v11, 2  ;;  %v461_v37 = vrot.slane %v416_v11, 3  ;;  %634 = vmatprep.subr.bf16.mxu0 %v2508_v38  ;;  %v2525_v53 = vld [vmem:[#allocation2 + $0x80] ss:$8 sps:$4 sm:$0x3f]  }
  0x5c   : > { %2490 = vrot.lane.b32.xlu1 %v2489_v23, %s2820_s26  ;;  %v475_v29 = vsel %vm472_vm3, %v473_v15, %v474_v25  ;;  %v477_v30 = vsel %vm472_vm3, %v474_v25, %v476_v26  ;;  %v478_v40 = vrot.slane %v416_v11, 4  ;;  %v623_v54 = vsel %vm438_vm2, %v2525_v53, 0  ;;  %v2527_v24 = vld [vmem:[%s3534_s2 + $0x4] ss:$8 sps:$4 sm:$0xff]   ;;  %v2529_v25 = vld [vmem:[%s3534_s2] ss:$8 sps:$4 sm:$0xff]  }
  0x5d   : > { %v2494_v33 = vpack.i.bf16 %v477_v30, %v475_v29  ;;  %v428_v36 = vsel %vm421_vm0, %v425_v5, %v427_v31  ;;  %v445_v39 = vsel %vm438_vm2, %v442_v14, %v444_v34  ;;  %v462_v42 = vsel %vm455_vm1, %v459_v8, %v461_v37  ;;  %1268 = vmatprep.subr.bf16.mxu1 %v2527_v24  ;;  %v2535_v29 = vld [vmem:[%s3534_s2 + $0x20] ss:$8 sps:$4 sm:$0xff]   ;;  %v2536_v30 = vld [vmem:[%s3534_s2 + $0x34] ss:$8 sps:$4 sm:$0xff]   ;;  %v2538_v31 = vld [vmem:[%s3534_s2 + $0x30] ss:$8 sps:$4 sm:$0xff]  }
  0x5e   : > { %v479_v44 = vsel %vm472_vm3, %v476_v26, %v478_v40  ;;  %635 = vmatpush1.bf16.msra.mxu0 %v2510_v41  ;;  %vm615_vm8 = vcmask 97280   ;;  %v2823_v23 = vmov 0.0   ;;  %vm2824_vm9 = vmmov 0   ;;  %v2530_v26 = vld [vmem:[%s3534_s2 + $0x14] ss:$8 sps:$4 sm:$0xff]   ;;  %1269 = vmatpush1.bf16.msra.mxu1 %v2529_v25  ;;  %s2293_s29 = sshll.u32 %s2909_s21, 4 }
  0x5f   : > { %2485 = vrot.lane.b32.xlu0 %v2484_v27, %s2821_s24  ;;  %636 = vmatprep.subr.bf16.mxu0 %v2511_v43  ;;  %v2532_v27 = vld [vmem:[%s3534_s2 + $0x10] ss:$8 sps:$4 sm:$0xff]   ;;  %v2539_v32 = vld [vmem:[%s3534_s2 + $0x44] ss:$8 sps:$4 sm:$0xff]   ;;  %v2542_v34 = vld [vmem:[%s3534_s2 + $0x54] ss:$8 sps:$4 sm:$0xff]  }
  0x60   : > { %2495 = vrot.lane.b32.xlu1 %v2494_v33, %s2822_s25  ;;  %1270 = vmatprep.subr.bf16.mxu1 %v2530_v26  ;;  %v2541_v33 = vld [vmem:[%s3534_s2 + $0x40] ss:$8 sps:$4 sm:$0xff]   ;;  %v2544_v35 = vld [vmem:[%s3534_s2 + $0x50] ss:$8 sps:$4 sm:$0xff]   ;;  %v2548_v38 = vld [vmem:[%s3534_s2 + $0x74] ss:$8 sps:$4 sm:$0xff]  }
  0x61   : > { %v2547_v37 = vld [vmem:[%s3534_s2 + $0x60] ss:$8 sps:$4 sm:$0xff]   ;;  %v2551_v40 = vld [vmem:[%s3534_s2 + $0x84] ss:$8 sps:$4 sm:$0xff]   ;;  %v2556_v43 = vld [vmem:[%s3534_s2 + $0x90] ss:$8 sps:$4 sm:$0xff]  }
  0x62   : > { %637 = vmatpush1.bf16.msra.mxu0 %v2513_v45  ;;  %1271 = vmatpush1.bf16.msra.mxu1 %v2532_v27  ;;  %v2553_v41 = vld [vmem:[%s3534_s2 + $0x80] ss:$8 sps:$4 sm:$0xff]   ;;  %vm716_vm10 = vcmask 1042432   ;;  %vm712_vm11 = vcmask 187392   ;;  %vm1398_vm12 = vcmask 56320   ;;  %vm1986_vm13 = vcmask 1040384  }
  0x63   : > { %433 = vrot.lane.b32.xlu0 %v428_v36, %s2819_s19  ;;  %638 = vmatprep.subr.bf16.mxu0 %v2514_v46  ;;  %v2545_v36 = vld [vmem:[%s3534_s2 + $0x64] ss:$8 sps:$4 sm:$0xff]   ;;  %v2559_v45 = vld [vmem:[%s3534_s2 + $0xa0] ss:$8 sps:$4 sm:$0xff]   ;;  %v2560_v46 = vld [vmem:[%s3534_s2 + $0xb4] ss:$8 sps:$4 sm:$0xff]  }
  0x64   : > { %450 = vrot.lane.b32.xlu1 %v445_v39, %s2821_s24  ;;  %1272 = vmatprep.subr.bf16.mxu1 %v2533_v28  ;;  %v2550_v39 = vld [vmem:[%s3534_s2 + $0x70] ss:$8 sps:$4 sm:$0xff]   ;;  %vm1982_vm14 = vcmask 408576   ;;  %vm2030_vm15 = vcmask 73728   ;;  %s406_s22 = scalar_lea.vmem [#allocation7], %s405_s16  ;;  %s2046_s30 = scalar_lea.sflag [#allocation4], %s405_s16 }
  0x65   : > { %s2058_s19 = sshll.u32 %s406_s22, 4  ;;  %p3566_p1 = scmp.ne.s32.totalorder %s3556_s27, 0  ;;  %s3491_s19 = int_to_ptr.vmem [resolvable:$true] %s2058_s19 }
  0x66   : > { %639 = vmatpush1.bf16.msra.mxu0 %v2516_v47  ;;  %1273 = vmatpush1.bf16.msra.mxu1 %v2535_v29  ;;  %v2562_v47 = vld [vmem:[%s3534_s2 + $0xb0] ss:$8 sps:$4 sm:$0xff]   ;;  %s2743_s14 = scalar_lea.vmem %s3491_s19, 16  ;;  %s2827_s21 = smov [#allocation7]  }
  0x67   : > { %467 = vrot.lane.b32.xlu0 %v462_v42, %s2820_s26  ;;  %640 = vmatprep.subr.bf16.mxu0 %v2517_v48  ;;  %v2554_v42 = vld [vmem:[%s3534_s2 + $0x94] ss:$8 sps:$4 sm:$0xff]   ;;  %v2563_v48 = vld [vmem:[%s3534_s2 + $0xc4] ss:$8 sps:$4 sm:$0xff]   ;;  %p2744_p12 = scmp.ne.s32.totalorder %s3491_s19, %s2743_s14  ;;  %s2747_s12 = sshll.u32 %s2827_s21, 4  ;;  %s2748_s12 = int_to_ptr.vmem [resolvable:$false] %s2747_s12 }
  0x68   : > { %484 = vrot.lane.b32.xlu1 %v479_v44, %s2822_s25  ;;  %1274 = vmatprep.subr.bf16.mxu1 %v2536_v30  ;;  %v2557_v44 = vld [vmem:[%s3534_s2 + $0xa4] ss:$8 sps:$4 sm:$0xff]   ;;  %s3489_s25 = scalar_lea.hbm %s3543_s11, %s2293_s29  ;;  %s2749_s23 = scalar_lea.vmem %s2748_s12, 32 }
  0x69   : > { %p2745_p2 = pnand %p2744_p12, %p3566_p1  ;;  %p2750_p4 = scmp.lt.s32.totalorder %s3491_s19, %s2748_s12 }
  0x6a   : > { %641 = vmatpush1.bf16.msra.mxu0 %v2519_v49  ;;  %1275 = vmatpush1.bf16.msra.mxu1 %v2538_v31  ;;  %v2565_v49 = vld [vmem:[%s3534_s2 + $0xc0] ss:$8 sps:$4 sm:$0xff]   ;;  %p2751_p7 = scmp.lt.s32.totalorder %s2749_s23, %s2743_s14 }
  0x6b   : > { %642 = vmatprep.subr.bf16.mxu0 %v2520_v50  ;;  %1276 = vmatprep.subr.bf16.mxu1 %v2539_v32  ;;  %p2746_p3 = pneg %p2745_p2 }
  0x6c   : > { %p2752_p8 = por %p2751_p7, %p2750_p4 }
  0x6e   : > { %643 = vmatpush1.bf16.msra.mxu0 %v2522_v51  ;;  %1277 = vmatpush1.bf16.msra.mxu1 %v2541_v33  ;;  %p2753_p11 = pnand %p2752_p8, %p2746_p3 }
  0x6f   : > { %2163 = vmatprep.subr.msk.bf16.mxu0 %vm438_vm2, %v2523_v52  ;;  %1278 = vmatprep.subr.bf16.mxu1 %v2542_v34 }
  0x72   : > { %645 = vmatpush1.bf16.msra.mxu0 %v623_v54  ;;  %1279 = vmatpush1.bf16.msra.mxu1 %v2544_v35 }
  0x73   : > { %2357 = vmatprep.subr.bf16.mxu0 %v2823_v23  ;;  %1280 = vmatprep.subr.bf16.mxu1 %v2545_v36 }
  0x76   : > { %1281 = vmatpush1.bf16.msra.mxu1 %v2547_v37 }
  0x77   : > { %1282 = vmatprep.subr.bf16.mxu1 %v2548_v38 }
  0x7a   : > { %1283 = vmatpush1.bf16.msra.mxu1 %v2550_v39 }
  0x7b   : > { %1284 = vmatprep.subr.bf16.mxu1 %v2551_v40 }
  0x7e   : > { %1285 = vmatpush1.bf16.msra.mxu1 %v2553_v41 }
  0x7f   : > { %1286 = vmatprep.subr.bf16.mxu1 %v2554_v42  ;;  %v2575_v42 = vld [vmem:[%s3534_s2 + $0x100] ss:$8 sps:$4 sm:$0xff]  }
  0x82   : > { %1287 = vmatpush1.bf16.msra.mxu1 %v2556_v43 }
  0x83   : > { %1288 = vmatprep.subr.bf16.mxu1 %v2557_v44  ;;  %v2580_v44 = vld [vmem:[%s3534_s2 + $0x114] ss:$8 sps:$4 sm:$0xff]  }
  0x86   : > { %1289 = vmatpush1.bf16.msra.mxu1 %v2559_v45 }
  0x87   : > { %1290 = vmatprep.subr.bf16.mxu1 %v2560_v46  ;;  %v2578_v46 = vld [vmem:[%s3534_s2 + $0x110] ss:$8 sps:$4 sm:$0xff]  }
  0x8a   : > { %1291 = vmatpush1.bf16.msra.mxu1 %v2562_v47  ;;  %v2583_v47 = vld [vmem:[%s3534_s2 + $0x124] ss:$8 sps:$4 sm:$0xff]  }
  0x8b   : > { %1292 = vmatprep.subr.bf16.mxu1 %v2563_v48  ;;  %v2581_v48 = vld [vmem:[%s3534_s2 + $0x120] ss:$8 sps:$4 sm:$0xff]  }
  0x8e   : > { %1293 = vmatpush1.bf16.msra.mxu1 %v2565_v49  ;;  %v2586_v49 = vld [vmem:[%s3534_s2 + $0x134] ss:$8 sps:$4 sm:$0xff]  }
  0xcd   : > { %v2481_v55 = vpop.permute.xlu0 %2480 }
  0xce   : > { %v2491_v56 = vpop.permute.xlu1 %2490  ;;  %v2483_v57 = vunpack.i.h.bf16 %v2481_v55  ;;  %v2482_v58 = vunpack.i.l.bf16 %v2481_v55 }
  0xcf   : > { %v2493_v60 = vunpack.i.h.bf16 %v2491_v56  ;;  %v2492_v61 = vunpack.i.l.bf16 %v2491_v56 }
  0xd0   : > { %v490_v6 = vsel %vm489_vm4, %v3014_v0, %v2482_v58  ;;  %v491_v7 = vsel %vm489_vm4, %v3016_v1, %v2483_v57 }
  0xd1   : > { %v2486_v59 = vpop.permute.xlu0 %2485 }
  0xd2   : > { %v2488_v62 = vunpack.i.h.bf16 %v2486_v59  ;;  %v2487_v63 = vunpack.i.l.bf16 %v2486_v59  ;;  %v2496_v3 = vpop.permute.xlu1 %2495 }
  0xd3   : > { %v2498_v4 = vunpack.i.h.bf16 %v2496_v3  ;;  %v2497_v5 = vunpack.i.l.bf16 %v2496_v3 }
  0xd4   : > { %v494_v8 = vsel %vm493_vm5, %v490_v6, %v2487_v63  ;;  %v495_v9 = vsel %vm493_vm5, %v491_v7, %v2488_v62 }
  0xd5   : > { %v434_v10 = vpop.permute.xlu0 %433  ;;  %v506_v11 = vpack.c.bf16 %v2498_v4, %v2497_v5  ;;  %v498_v12 = vsel %vm497_vm6, %v494_v8, %v2492_v61  ;;  %v499_v13 = vsel %vm497_vm6, %v495_v9, %v2493_v60  ;;  %v2825_v8 = vmov 65535  }
  0xd6   : > { %v492_v14 = vsel %vm489_vm4, %v3018_v2, %v434_v10  ;;  %v451_v15 = vpop.permute.xlu1 %450  ;;  %v502_v0 = vsel %vm501_vm7, %v498_v12, %v2497_v5  ;;  %v503_v16 = vsel %vm501_vm7, %v499_v13, %v2498_v4  ;;  %v717_v9 = vsel %vm716_vm10, 4294967295, %v2825_v8  ;;  %v2616_v8 = vld [vmem:[%s3534_s2 + $0x1d4] ss:$8 sps:$4 sm:$0xff]  }
  0xd7   : > { %v496_v1 = vsel %vm493_vm5, %v492_v14, %v451_v15  ;;  %2164 = vmatprep.mubr.msk.bf16.mxu0 %vm615_vm8, %v506_v11  ;;  %v505_v17 = vpack.c.bf16 %v503_v16, %v502_v0  ;;  %v3149_v12 = vsel %vm472_vm3, %v717_v9, 0  ;;  %v2526_v14 = vld [vmem:[%s3541_s9] sm:$0x3f]   ;;  %v2566_v15 = vld [vmem:[%s3534_s2 + $0xd4] ss:$8 sps:$4 sm:$0xff]  }
  0xd8   : > { %v2568_v0 = vld [vmem:[%s3534_s2 + $0xd0] ss:$8 sps:$4 sm:$0xff]   ;;  %1294 = vmatprep.subr.bf16.mxu1 %v2566_v15  ;;  %v2569_v16 = vld [vmem:[%s3534_s2 + $0xe4] ss:$8 sps:$4 sm:$0xff]  }
  0xd9   : > { %661 = vmatmul.mubr.bf16.vlgmr.msra.gmra.mrb[0].mxu0 %v505_v17  ;;  %v468_v18 = vpop.permute.xlu0 %467  ;;  %1295 = vmatpush1.bf16.msra.mxu1 %v2568_v0  ;;  %v2572_v17 = vld [vmem:[%s3534_s2 + $0xf4] ss:$8 sps:$4 sm:$0xff]   ;;  %v2614_v9 = vld [vmem:[%s3534_s2 + $0x1d0] ss:$8 sps:$4 sm:$0xff]   ;;  %v2625_v15 = vld [vmem:[%s3534_s2 + $0x204] ss:$8 sps:$4 sm:$0xff]  }
  0xda   : > { %v500_v19 = vsel %vm497_vm6, %v496_v1, %v468_v18  ;;  %v485_v20 = vpop.permute.xlu1 %484  ;;  %v2571_v1 = vld [vmem:[%s3534_s2 + $0xe0] ss:$8 sps:$4 sm:$0xff]   ;;  %1296 = vmatprep.subr.bf16.mxu1 %v2569_v16  ;;  %v2574_v18 = vld [vmem:[%s3534_s2 + $0xf0] ss:$8 sps:$4 sm:$0xff]  }
  0xdb   : > { %v508_v21 = vpack.c.bf16 %v485_v20, %v485_v20  ;;  %v504_v22 = vsel %vm501_vm7, %v500_v19, %v485_v20  ;;  %v2577_v19 = vld [vmem:[%s3534_s2 + $0x104] ss:$8 sps:$4 sm:$0xff]   ;;  %v2166_v20 = vld [vmem:[#allocation5] ss:$0 sm:$0xff]  ;;  %v2623_v0 = vld [vmem:[%s3534_s2 + $0x200] ss:$8 sps:$4 sm:$0xff]  }
  0xdc   : > { %v507_v2 = vpack.c.bf16 %v504_v22, %v504_v22 }
  0xdd   : > { %2165 = vmatprep.mubr.msk.bf16.mxu0 %vm615_vm8, %v508_v21  ;;  %1297 = vmatpush1.bf16.msra.mxu1 %v2571_v1  ;;  %v2628_v1 = vld [vmem:[%s3534_s2 + $0x214] ss:$8 sps:$4 sm:$0xff]  }
  0xde   : > { %1298 = vmatprep.subr.bf16.mxu1 %v2572_v17  ;;  %v2626_v17 = vld [vmem:[%s3534_s2 + $0x210] ss:$8 sps:$4 sm:$0xff]  }
  0xe1   : > { %671 = vmatmul.mubr.bf16.gmra.mrb[4].mxu0 %v507_v2  ;;  %1299 = vmatpush1.bf16.msra.mxu1 %v2574_v18  ;;  %v2826_v18 = vmov 0  }
  0xe2   : > { %2361 = vmatprep.mubr.msk.bf16.mxu0 %vm2824_vm9, %v2823_v23  ;;  %1309 = vmatprep.subr.bf16.mxu1 %v2577_v19  ;;  %v2631_v19 = vld [vmem:[%s3534_s2 + $0x224] ss:$8 sps:$4 sm:$0xff]  }
 0x1ac   : > { %v662_v50 = vpop.f32.mrb[0].mxu0 }
 0x1ad   : > { %v664_v51 = vpop.f32.mrb[1].mxu0 }
 0x1ae   : > { %v679_v52 = vmax.f32 %v662_v50, %v664_v51  ;;  %v666_v53 = vpop.f32.mrb[2].mxu0  ;;  %v2584_v50 = vld [vmem:[%s3534_s2 + $0x130] ss:$8 sps:$4 sm:$0xff]   ;;  %v2589_v51 = vld [vmem:[%s3534_s2 + $0x144] ss:$8 sps:$4 sm:$0xff]  }
 0x1af   : > { %v668_v54 = vpop.f32.mrb[3].mxu0 }
 0x1b0   : > { %v680_v55 = vmax.f32 %v666_v53, %v668_v54  ;;  %v685_v56 = vrot.slane %v679_v52, 1  ;;  %v2592_v53 = vld [vmem:[%s3534_s2 + $0x154] ss:$8 sps:$4 sm:$0xff]   ;;  %v2590_v54 = vld [vmem:[%s3534_s2 + $0x150] ss:$8 sps:$4 sm:$0xff]  }
 0x1b2   : > { %v686_v57 = vrot.slane %v680_v55, 1 }
 0x1b4   : > { %v687_v58 = vsel %vm421_vm0, %v685_v56, %v686_v57  ;;  %v672_v59 = vpop.f32.mrb[4].mxu0  ;;  %v2593_v56 = vld [vmem:[%s3534_s2 + $0x160] ss:$8 sps:$4 sm:$0xff]  }
 0x1b5   : > { %v693_v60 = vmax.f32 %v679_v52, %v687_v58  ;;  %v674_v61 = vpop.f32.mrb[5].mxu0  ;;  %v2587_v52 = vld [vmem:[%s3534_s2 + $0x140] ss:$8 sps:$4 sm:$0xff]   ;;  %v2596_v58 = vld [vmem:[%s3534_s2 + $0x170] ss:$8 sps:$4 sm:$0xff]  }
 0x1b6   : > { %v681_v62 = vmax.f32 %v672_v59, %v674_v61  ;;  %v676_v63 = vpop.f32.mrb[6].mxu0  ;;  %v2601_v59 = vld [vmem:[%s3534_s2 + $0x184] ss:$8 sps:$4 sm:$0xff]   ;;  %v2604_v61 = vld [vmem:[%s3534_s2 + $0x194] ss:$8 sps:$4 sm:$0xff]  }
 0x1b7   : > { %v677_v3 = vpop.f32.mrb[7].mxu0  ;;  %v2607_v63 = vld [vmem:[%s3534_s2 + $0x1a4] ss:$8 sps:$4 sm:$0xff]  }
 0x1b8   : > { %v688_v4 = vrot.slane %v681_v62, 1  ;;  %v2605_v3 = vld [vmem:[%s3534_s2 + $0x1a0] ss:$8 sps:$4 sm:$0xff]  }
 0x1ba   : > { %v689_v5 = vsel %vm421_vm0, %v686_v57, %v688_v4  ;;  %v695_v6 = vmax.f32 %v681_v62, %v688_v4  ;;  %v2598_v57 = vld [vmem:[%s3534_s2 + $0x174] ss:$8 sps:$4 sm:$0xff]   ;;  %v2602_v62 = vld [vmem:[%s3534_s2 + $0x190] ss:$8 sps:$4 sm:$0xff]  }
 0x1bb   : > { %v694_v7 = vmax.f32 %v680_v55, %v689_v5  ;;  %v2595_v55 = vld [vmem:[%s3534_s2 + $0x164] ss:$8 sps:$4 sm:$0xff]   ;;  %v2610_v4 = vld [vmem:[%s3534_s2 + $0x1b4] ss:$8 sps:$4 sm:$0xff]   ;;  %v2608_v5 = vld [vmem:[%s3534_s2 + $0x1b0] ss:$8 sps:$4 sm:$0xff]  }
 0x1bc   : > { %v697_v10 = vpack.c.bf16 %v695_v6, %v695_v6  ;;  %v2613_v6 = vld [vmem:[%s3534_s2 + $0x1c4] ss:$8 sps:$4 sm:$0xff]  }
 0x1bd   : > { %v696_v11 = vpack.c.bf16 %v694_v7, %v693_v60  ;;  %v2599_v60 = vld [vmem:[%s3534_s2 + $0x180] ss:$8 sps:$4 sm:$0xff]  }
 0x1be   : > { %v720_v13 = vand.u32 %v3149_v12, %v697_v10  ;;  %v2611_v7 = vld [vmem:[%s3534_s2 + $0x1c0] ss:$8 sps:$4 sm:$0xff]   ;;  %v2619_v10 = vld [vmem:[%s3534_s2 + $0x1e4] ss:$8 sps:$4 sm:$0xff]  }
 0x1bf   : > { %2358 = vmatpush3.bf16.msra.mxu0 %v696_v11  ;;  %v2617_v11 = vld [vmem:[%s3534_s2 + $0x1e0] ss:$8 sps:$4 sm:$0xff]  }
 0x1c0   : > { %2359 = vmatprep.subr.bf16.mxu0 %v2823_v23 }
 0x1c3   : > { %2360 = vmatpush3.bf16.msra.mxu0 %v720_v13  ;;  %v2622_v13 = vld [vmem:[%s3534_s2 + $0x1f4] ss:$8 sps:$4 sm:$0xff]  }
 0x1c4   : > { %2365 = vmatprep.subr.bf16.mxu0 %v2823_v23 }
 0x1c6   : > { %2362 = vmatmul.mubr.msk.bf16.vlgmr.msra.gmra.mrb[8].mxu0 %vm712_vm11, %v2526_v14  ;;  %v2620_v14 = vld [vmem:[%s3534_s2 + $0x1f0] ss:$8 sps:$4 sm:$0xff]  }
 0x1c7   : > { %2367 = vmatprep.mubr.msk.bf16.mxu0 %vm2824_vm9, %v2823_v23 }
 0x299   : > { %v756_v21 = vpop.f32.mrb[8].mxu0 }
 0x29a   : > { %v757_v22 = vadd.f32 %v2166_v20, %v756_v21  ;;  %v2363_v2 = vpop.f32.mrb[9].mxu0  ;;  %v2634_v21 = vld [vmem:[%s3534_s2 + $0x234] ss:$8 sps:$4 sm:$0xff]  }
 0x29b   : > { %v759_v24 = vpop.f32.mrb[10].mxu0  ;;  %v2637_v2 = vld [vmem:[%s3534_s2 + $0x244] ss:$8 sps:$4 sm:$0xff]  }
 0x29c   : > { %v763_v25 = vmax.f32 %v757_v22, 0.0  ;;  %v760_v26 = vadd.f32 %v2166_v20, %v759_v24  ;;  %v2364_v27 = vpop.f32.mrb[11].mxu0  ;;  %v2629_v20 = vld [vmem:[%s3534_s2 + $0x220] ss:$8 sps:$4 sm:$0xff]   ;;  %v2632_v22 = vld [vmem:[%s3534_s2 + $0x230] ss:$8 sps:$4 sm:$0xff]  }
 0x29d   : > { %v2635_v24 = vld [vmem:[%s3534_s2 + $0x240] ss:$8 sps:$4 sm:$0xff]   ;;  %v2643_v27 = vld [vmem:[%s3534_s2 + $0x264] ss:$8 sps:$4 sm:$0xff]  }
 0x29e   : > { %v764_v28 = vmax.f32 %v760_v26, 0.0  ;;  %v767_v29 = vrot.slane %v763_v25, 1  ;;  %v775_v30 = vrot.slane %v763_v25, 3  ;;  %v771_v31 = vrot.slane %v763_v25, 2  ;;  %v2638_v26 = vld [vmem:[%s3534_s2 + $0x250] ss:$8 sps:$4 sm:$0xff]  }
 0x29f   : > { %v779_v32 = vrot.slane %v763_v25, 4  ;;  %v783_v43 = vpack.c.bf16 %v763_v25, %v763_v25  ;;  %v2640_v25 = vld [vmem:[%s3534_s2 + $0x254] ss:$8 sps:$4 sm:$0xff]  }
 0x2a0   : > { %v772_v33 = vrot.slane %v764_v28, 2  ;;  %v780_v34 = vrot.slane %v764_v28, 4  ;;  %v768_v35 = vrot.slane %v764_v28, 1  ;;  %v776_v36 = vrot.slane %v764_v28, 3  ;;  %v2641_v28 = vld [vmem:[%s3534_s2 + $0x260] ss:$8 sps:$4 sm:$0xff]  }
 0x2a2   : > { %v769_v37 = vsel %vm421_vm0, %v767_v29, %v768_v35  ;;  %v777_v38 = vsel %vm455_vm1, %v775_v30, %v776_v36  ;;  %v3183_v39 = vsel %vm438_vm2, %v771_v31, %v772_v33  ;;  %v3186_v40 = vsel %vm472_vm3, %v779_v32, %v780_v34  ;;  %v2646_v29 = vld [vmem:[%s3534_s2 + $0x274] ss:$8 sps:$4 sm:$0xff]   ;;  %v2644_v30 = vld [vmem:[%s3534_s2 + $0x270] ss:$8 sps:$4 sm:$0xff]  }
 0x2a3   : > { %v784_v41 = vpack.c.bf16 %v769_v37, %v769_v37  ;;  %v786_v45 = vpack.c.bf16 %v777_v38, %v777_v38  ;;  %v785_v16 = vpack.c.bf16 %v3183_v39, %v3183_v39  ;;  %v787_v31 = vpack.c.bf16 %v3186_v40, %v3186_v40  ;;  %v2252_v40 = vld [vmem:[%s3542_s10 + $0x2] sm:$0x1] }
 0x2a5   : > { %1300 = vmatprep.mubr.bf16.mxu1 %v784_v41 }
 0x2a6   : > { %1301 = vmatmul.mubr.bf16.vlgmr.msra.gmra.mrb[0].mxu1 %v783_v43  ;;  %v2647_v43 = vld [vmem:[%s3535_s3 + $0x40] sm:$0xff]  }
 0x2a7   : > { %1310 = vmatpush1.bf16.msra.mxu1 %v2575_v42  ;;  %1341 = vmatprep.mubr.bf16.mxu1 %v786_v45  ;;  %v1397_v42 = vld [vmem:[%s3542_s10] sm:$0x1] }
 0x2a8   : > { %1311 = vmatprep.subr.bf16.mxu1 %v2580_v44  ;;  %v2254_v44 = vld [vmem:[%s3542_s10 + $0x3] sm:$0x1] }
 0x2a9   : > { %v2648_v45 = vld [vmem:[%s3535_s3] sm:$0xff]  }
 0x2ab   : > { %1312 = vmatpush1.bf16.msra.mxu1 %v2578_v46  ;;  %v2649_v46 = vld [vmem:[%s3535_s3 + $0x48] sm:$0xff]  }
 0x2ac   : > { %1313 = vmatprep.subr.bf16.mxu1 %v2583_v47  ;;  %v2650_v47 = vld [vmem:[%s3535_s3 + $0x8] sm:$0xff]  }
 0x2af   : > { %1314 = vmatpush1.bf16.msra.mxu1 %v2581_v48  ;;  %v2651_v48 = vld [vmem:[%s3535_s3 + $0x50] sm:$0xff]  }
 0x2b0   : > { %1315 = vmatprep.subr.bf16.mxu1 %v2586_v49  ;;  %v2652_v49 = vld [vmem:[%s3535_s3 + $0x10] sm:$0xff]  }
 0x2b3   : > { %1316 = vmatpush1.bf16.msra.mxu1 %v2584_v50  ;;  %v2653_v50 = vld [vmem:[%s3535_s3 + $0x58] sm:$0xff]  }
 0x2b4   : > { %1317 = vmatprep.subr.bf16.mxu1 %v2589_v51  ;;  %v2654_v51 = vld [vmem:[%s3535_s3 + $0x18] sm:$0xff]  }
 0x2b7   : > { %1318 = vmatpush1.bf16.msra.mxu1 %v2587_v52  ;;  %v2655_v52 = vld [vmem:[%s3535_s3 + $0x60] sm:$0xff]  }
 0x2b8   : > { %1319 = vmatprep.subr.bf16.mxu1 %v2592_v53  ;;  %v2656_v53 = vld [vmem:[%s3535_s3 + $0x20] sm:$0xff]  }
 0x2bb   : > { %1320 = vmatpush1.bf16.msra.mxu1 %v2590_v54  ;;  %v2657_v54 = vld [vmem:[%s3535_s3 + $0x68] sm:$0xff]  }
 0x2bc   : > { %1321 = vmatprep.subr.bf16.mxu1 %v2595_v55  ;;  %v2658_v55 = vld [vmem:[%s3535_s3 + $0x28] sm:$0xff]  }
 0x2bf   : > { %1322 = vmatpush1.bf16.msra.mxu1 %v2593_v56  ;;  %v2659_v56 = vld [vmem:[%s3535_s3 + $0x70] sm:$0xff]  }
 0x2c0   : > { %1323 = vmatprep.subr.bf16.mxu1 %v2598_v57  ;;  %v2660_v57 = vld [vmem:[%s3535_s3 + $0x30] sm:$0xff]  }
 0x2c3   : > { %1324 = vmatpush1.bf16.msra.mxu1 %v2596_v58  ;;  %v2661_v58 = vld [vmem:[%s3535_s3 + $0x78] sm:$0xff]  }
 0x2c4   : > { %1325 = vmatprep.subr.bf16.mxu1 %v2601_v59  ;;  %v2662_v59 = vld [vmem:[%s3535_s3 + $0x38] sm:$0xff]  }
 0x2c7   : > { %1326 = vmatpush1.bf16.msra.mxu1 %v2599_v60  ;;  %v2663_v60 = vld [vmem:[%s3535_s3 + $0xc0] sm:$0xff]  }
 0x2c8   : > { %1327 = vmatprep.subr.bf16.mxu1 %v2604_v61  ;;  %v1582_v61 = vlaneseq }
 0x2cb   : > { %1328 = vmatpush1.bf16.msra.mxu1 %v2602_v62  ;;  %v1583_v62 = vshrl.u32 %v1582_v61, 7 }
 0x2cc   : > { %1329 = vmatprep.subr.bf16.mxu1 %v2607_v63 }
 0x2cd   : > { %v1584_v63 = vsub.s32 0, %v1583_v62 }
 0x2cf   : > { %1330 = vmatpush1.bf16.msra.mxu1 %v2605_v3  ;;  %v1580_v3 = vld [vmem:[%s3538_s6] sm:$0xf] }
 0x2d0   : > { %1331 = vmatprep.subr.bf16.mxu1 %v2610_v4 }
 0x2d3   : > { %1332 = vmatpush1.bf16.msra.mxu1 %v2608_v5 }
 0x2d4   : > { %1333 = vmatprep.subr.bf16.mxu1 %v2613_v6  ;;  %v1588_v6 = vsub.s32 1, %v1583_v62 }
 0x2d7   : > { %1334 = vmatpush1.bf16.msra.mxu1 %v2611_v7  ;;  %v1585_v7 = vrot.slane %v1580_v3, %v1584_v63 }
 0x2d8   : > { %1335 = vmatprep.subr.bf16.mxu1 %v2616_v8 }
 0x2db   : > { %1336 = vmatpush1.bf16.msra.mxu1 %v2614_v9 }
 0x2dc   : > { %1337 = vmatprep.subr.bf16.mxu1 %v2619_v10  ;;  %v1589_v10 = vrot.slane %v1580_v3, %v1588_v6 }
 0x2df   : > { %1338 = vmatpush1.bf16.msra.mxu1 %v2617_v11 }
 0x2e0   : > { %1339 = vmatprep.subr.bf16.mxu1 %v2622_v13 }
 0x2e3   : > { %1340 = vmatpush1.bf16.msra.mxu1 %v2620_v14 }
 0x2e4   : > { %1350 = vmatprep.subr.bf16.mxu1 %v2625_v15 }
 0x2e6   : > { %1342 = vmatmul.mubr.bf16.vlgmr.msra.gmra.mrb[0].mxu1 %v785_v16 }
 0x2e7   : > { %1351 = vmatpush1.bf16.msra.mxu1 %v2623_v0  ;;  %1382 = vmatprep.mubr.bf16.mxu1 %v2826_v18 }
 0x2e8   : > { %1352 = vmatprep.subr.bf16.mxu1 %v2628_v1 }
 0x2eb   : > { %1353 = vmatpush1.bf16.msra.mxu1 %v2626_v17 }
 0x2ec   : > { %1354 = vmatprep.subr.bf16.mxu1 %v2631_v19  ;;  %v2664_v19 = vld [vmem:[%s3535_s3 + $0x80] sm:$0xff]  }
 0x2ef   : > { %1355 = vmatpush1.bf16.msra.mxu1 %v2629_v20 }
 0x2f0   : > { %1356 = vmatprep.subr.bf16.mxu1 %v2634_v21  ;;  %v2665_v21 = vld [vmem:[%s3535_s3 + $0xc8] sm:$0xff]  }
 0x2f3   : > { %1357 = vmatpush1.bf16.msra.mxu1 %v2632_v22 }
 0x2f4   : > { %1358 = vmatprep.subr.bf16.mxu1 %v2637_v2  ;;  %v2666_v2 = vld [vmem:[%s3535_s3 + $0x88] sm:$0xff]  }
 0x2f7   : > { %1359 = vmatpush1.bf16.msra.mxu1 %v2635_v24 }
 0x2f8   : > { %1360 = vmatprep.subr.bf16.mxu1 %v2640_v25  ;;  %v1596_v25 = vsub.s32 3, %v1583_v62 }
 0x2fb   : > { %1361 = vmatpush1.bf16.msra.mxu1 %v2638_v26  ;;  %v2667_v26 = vld [vmem:[%s3535_s3 + $0xd0] sm:$0xff]  }
 0x2fc   : > { %1362 = vmatprep.subr.bf16.mxu1 %v2643_v27 }
 0x2ff   : > { %1363 = vmatpush1.bf16.msra.mxu1 %v2641_v28 }
 0x300   : > { %1364 = vmatprep.subr.bf16.mxu1 %v2646_v29  ;;  %v2668_v29 = vld [vmem:[%s3535_s3 + $0x90] sm:$0xff]  }
 0x303   : > { %1365 = vmatpush1.bf16.msra.mxu1 %v2644_v30  ;;  %v1597_v30 = vrot.slane %v1580_v3, %v1596_v25 }
 0x306   : > { %1383 = vmatmul.mubr.bf16.vlgmr.msra.gmra.mrb[0].mxu1 %v787_v31  ;;  %v2669_v31 = vld [vmem:[%s3535_s3 + $0xd8] sm:$0xff]  }
 0x3d9   : > { %v1384_v32 = vpop.f32.mrb[0].mxu1 }
 0x3da   : > { %v1386_v33 = vpop.f32.mrb[1].mxu1 }
 0x3db   : > { %v1391_v34 = vmax.f32 %v1384_v32, %v1386_v33  ;;  %v1388_v35 = vpop.f32.mrb[2].mxu1  ;;  %v2670_v33 = vld [vmem:[%s3535_s3 + $0x98] sm:$0xff]  }
 0x3dc   : > { %v1389_v36 = vpop.f32.mrb[3].mxu1 }
 0x3dd   : > { %v1393_v37 = vrot.slane %v1391_v34, 1  ;;  %v2671_v36 = vld [vmem:[%s3535_s3 + $0xe0] sm:$0xff]  }
 0x3df   : > { %v1395_v38 = vmax.f32 %v1391_v34, %v1393_v37 }
 0x3e1   : > { %v1396_v39 = vpack.c.bf16 %v1395_v38, %v1395_v38 }
 0x3e3   : > { %v1403_v41 = vand.u32 %v1396_v39, %v3149_v12  ;;  %v2250_v12 = vld [vmem:[%s3542_s10 + $0x1] sm:$0x1] }
 0x3e5   : > { %2366 = vmatpush3.bf16.msra.mxu0 %v1403_v41 }
 0x3e6   : > { %2371 = vmatprep.subr.bf16.mxu0 %v2823_v23 }
 0x3e8   : > { %2368 = vmatmul.mubr.msk.bf16.vlgmr.msra.gmra.mrb[12].mxu0 %vm1398_vm12, %v1397_v42 }
 0x3e9   : > { %2372 = vmatpush3.bf16.msra.mxu0 %v1403_v41  ;;  %2373 = vmatprep.mubr.msk.bf16.mxu0 %vm2824_vm9, %v2823_v23 }
 0x3ea   : > { %2377 = vmatprep.subr.bf16.mxu0 %v2823_v23 }
 0x3f0   : > { %2374 = vmatmul.mubr.msk.bf16.vlgmr.msra.gmra.mrb[16].mxu0 %vm1398_vm12, %v2250_v12  ;;  %v1592_v12 = vsub.s32 2, %v1583_v62  ;;  %v1678_v62 = vld [vmem:[%s3539_s7] sm:$0x1] }
 0x3f1   : > { %2378 = vmatpush3.bf16.msra.mxu0 %v1403_v41  ;;  %2379 = vmatprep.mubr.msk.bf16.mxu0 %vm2824_vm9, %v2823_v23 }
 0x3f2   : > { %2383 = vmatprep.subr.bf16.mxu0 %v2823_v23 }
 0x3f8   : > { %2380 = vmatmul.mubr.msk.bf16.vlgmr.msra.gmra.mrb[20].mxu0 %vm1398_vm12, %v2252_v40  ;;  %v2673_v40 = vld [vmem:[%s3535_s3 + $0xe8] sm:$0xff]  }
 0x3f9   : > { %2384 = vmatpush3.bf16.msra.mxu0 %v1403_v41  ;;  %2385 = vmatprep.mubr.msk.bf16.mxu0 %vm2824_vm9, %v2823_v23  ;;  %v2672_v41 = vld [vmem:[%s3535_s3 + $0xa0] sm:$0xff]  }
 0x3fa   : > { %2308 = vmatprep.subr.bf16.mxu0 %v2647_v43  ;;  %v2674_v43 = vld [vmem:[%s3535_s3 + $0xa8] sm:$0xff]  }
 0x400   : > { %2386 = vmatmul.mubr.msk.bf16.vlgmr.msra.gmra.mrb[24].mxu0 %vm1398_vm12, %v2254_v44  ;;  %v1593_v44 = vrot.slane %v1580_v3, %v1592_v12 }
 0x401   : > { %2309 = vmatpush3.bf16.msra.mxu0 %v2648_v45  ;;  %v2675_v45 = vld [vmem:[%s3535_s3 + $0xf0] sm:$0xff]  }
 0x402   : > { %2310 = vmatprep.subr.bf16.mxu0 %v2649_v46  ;;  %v2676_v46 = vld [vmem:[%s3535_s3 + $0xb0] sm:$0xff]  }
 0x405   : > { %2311 = vmatpush3.bf16.msra.mxu0 %v2650_v47 }
 0x406   : > { %2312 = vmatprep.subr.bf16.mxu0 %v2651_v48  ;;  %v2677_v48 = vld [vmem:[%s3535_s3 + $0xf8] sm:$0xff]  }
 0x409   : > { %2313 = vmatpush3.bf16.msra.mxu0 %v2652_v49  ;;  %v2678_v49 = vld [vmem:[%s3535_s3 + $0xb8] sm:$0xff]  }
 0x40a   : > { %2314 = vmatprep.subr.bf16.mxu0 %v2653_v50 }
 0x40d   : > { %2315 = vmatpush3.bf16.msra.mxu0 %v2654_v51 }
 0x40e   : > { %2316 = vmatprep.subr.bf16.mxu0 %v2655_v52  ;;  %v2679_v52 = vld [vmem:[%s3536_s4] sm:$0xff]  }
 0x411   : > { %2317 = vmatpush3.bf16.msra.mxu0 %v2656_v53  ;;  %v2680_v53 = vld [vmem:[%s3536_s4 + $0x8] sm:$0xff]  }
 0x412   : > { %2318 = vmatprep.subr.bf16.mxu0 %v2657_v54  ;;  %v2681_v54 = vld [vmem:[%s3536_s4 + $0x10] sm:$0xff]  }
 0x415   : > { %2319 = vmatpush3.bf16.msra.mxu0 %v2658_v55  ;;  %v2682_v55 = vld [vmem:[%s3536_s4 + $0x18] ss:$0 sps:$4 sm:$0x11]  }
 0x416   : > { %2320 = vmatprep.subr.bf16.mxu0 %v2659_v56  ;;  %v1988_v56 = vsel %vm1986_vm13, %v2682_v55, 0 }
 0x419   : > { %2321 = vmatpush3.bf16.msra.mxu0 %v2660_v57 }
 0x41a   : > { %2322 = vmatprep.subr.bf16.mxu0 %v2661_v58 }
 0x41d   : > { %2323 = vmatpush3.bf16.msra.mxu0 %v2662_v59 }
 0x41e   : > { %2330 = vmatprep.subr.bf16.mxu0 %v2663_v60 }
 0x4bb   : > { %v1439_v4 = vpop.f32.mrb[12].mxu0 }
 0x4bc   : > { %v2369_v5 = vpop.f32.mrb[13].mxu0  ;;  %v1602_v11 = vadd.f32 %v1585_v7, %v1439_v4 }
 0x4bd   : > { %v1442_v8 = vpop.f32.mrb[14].mxu0 }
 0x4be   : > { %v2370_v9 = vpop.f32.mrb[15].mxu0  ;;  %v1606_v0 = vmax.f32 %v1602_v11, 0.0 }
 0x4c0   : > { %v1610_v20 = vpack.c.bf16 %v1606_v0, %v1606_v0 }
 0x4c3   : > { %v1484_v13 = vpop.f32.mrb[16].mxu0 }
 0x4c4   : > { %v1603_v14 = vadd.f32 %v1589_v10, %v1484_v13  ;;  %v2375_v15 = vpop.f32.mrb[17].mxu0  ;;  %v1960_v10 = vld [vmem:[%s3540_s8] sm:$0x1] }
 0x4c5   : > { %v1487_v16 = vpop.f32.mrb[18].mxu0 }
 0x4c6   : > { %v1607_v1 = vmax.f32 %v1603_v14, 0.0  ;;  %v2376_v17 = vpop.f32.mrb[19].mxu0 }
 0x4c8   : > { %v1611_v18 = vpack.c.bf16 %v1607_v1, %v1607_v1 }
 0x4ca   : > { %1903 = vmatprep.mubr.bf16.mxu0 %v1611_v18 }
 0x4cb   : > { %1904 = vmatmul.mubr.bf16.vlgmr.msra.gmra.mrb[28].mxu0 %v1610_v20  ;;  %v1529_v22 = vpop.f32.mrb[20].mxu0 }
 0x4cc   : > { %2331 = vmatpush3.bf16.msra.mxu0 %v2664_v19  ;;  %v2381_v24 = vpop.f32.mrb[21].mxu0  ;;  %v1604_v47 = vadd.f32 %v1593_v44, %v1529_v22 }
 0x4cd   : > { %2332 = vmatprep.subr.bf16.mxu0 %v2665_v21  ;;  %v1532_v27 = vpop.f32.mrb[22].mxu0 }
 0x4ce   : > { %v2382_v28 = vpop.f32.mrb[23].mxu0  ;;  %v1608_v50 = vmax.f32 %v1604_v47, 0.0 }
 0x4d0   : > { %2333 = vmatpush3.bf16.msra.mxu0 %v2666_v2  ;;  %v1612_v51 = vpack.c.bf16 %v1608_v50, %v1608_v50 }
 0x4d1   : > { %2334 = vmatprep.subr.bf16.mxu0 %v2667_v26 }
 0x4d3   : > { %v1574_v32 = vpop.f32.mrb[24].mxu0 }
 0x4d4   : > { %2335 = vmatpush3.bf16.msra.mxu0 %v2668_v29  ;;  %v1605_v34 = vadd.f32 %v1597_v30, %v1574_v32  ;;  %v2387_v35 = vpop.f32.mrb[25].mxu0 }
 0x4d5   : > { %2336 = vmatprep.subr.bf16.mxu0 %v2669_v31  ;;  %v1577_v37 = vpop.f32.mrb[26].mxu0 }
 0x4d6   : > { %v1609_v38 = vmax.f32 %v1605_v34, 0.0  ;;  %v2388_v39 = vpop.f32.mrb[27].mxu0 }
 0x4d8   : > { %2337 = vmatpush3.bf16.msra.mxu0 %v2670_v33  ;;  %v1613_v42 = vpack.c.bf16 %v1609_v38, %v1609_v38 }
 0x4d9   : > { %2338 = vmatprep.subr.bf16.mxu0 %v2671_v36 }
 0x4da   : > { %1943 = vmatprep.mubr.bf16.mxu0 %v1613_v42 }
 0x4dc   : > { %2339 = vmatpush3.bf16.msra.mxu0 %v2672_v41 }
 0x4dd   : > { %2340 = vmatprep.subr.bf16.mxu0 %v2673_v40 }
 0x4e0   : > { %2341 = vmatpush3.bf16.msra.mxu0 %v2674_v43 }
 0x4e1   : > { %2342 = vmatprep.subr.bf16.mxu0 %v2675_v45 }
 0x4e4   : > { %2343 = vmatpush3.bf16.msra.mxu0 %v2676_v46 }
 0x4e5   : > { %2344 = vmatprep.subr.bf16.mxu0 %v2677_v48 }
 0x4e8   : > { %2345 = vmatpush3.bf16.msra.mxu0 %v2678_v49 }
 0x4e9   : > { %2389 = vmatprep.subr.bf16.mxu0 %v2823_v23 }
 0x4eb   : > { %1944 = vmatmul.mubr.bf16.vlgmr.msra.gmra.mrb[32].mxu0 %v1612_v51 }
 0x4ec   : > { %2397 = vmatprep.mubr.msk.bf16.mxu0 %vm2824_vm9, %v2823_v23  ;;  %2390 = vmatpush3.bf16.msra.mxu0 %v2679_v52 }
 0x4ed   : > { %2391 = vmatprep.subr.bf16.mxu0 %v2823_v23 }
 0x4f0   : > { %2392 = vmatpush3.bf16.msra.mxu0 %v2680_v53 }
 0x4f1   : > { %2393 = vmatprep.subr.bf16.mxu0 %v2823_v23 }
 0x4f4   : > { %2394 = vmatpush3.bf16.msra.mxu0 %v2681_v54 }
 0x4f5   : > { %2395 = vmatprep.subr.bf16.mxu0 %v2823_v23 }
 0x4f8   : > { %2396 = vmatpush3.bf16.msra.mxu0 %v1988_v56 }
 0x59e   : > { %v2324_v57 = vpop.f32.mrb[28].mxu0 }
 0x59f   : > { %v2325_v58 = vpop.f32.mrb[29].mxu0 }
 0x5a0   : > { %v2326_v59 = vadd.f32 %v2325_v58, %v2324_v57  ;;  %v2327_v60 = vpop.f32.mrb[30].mxu0 }
 0x5a1   : > { %v2328_v61 = vpop.f32.mrb[31].mxu0 }
 0x5a2   : > { %v1906_v4 = vadd.f32 %v2326_v59, %v1678_v62 }
 0x5be   : > { %v2346_v63 = vpop.f32.mrb[32].mxu0 }
 0x5bf   : > { %v2347_v3 = vpop.f32.mrb[33].mxu0 }
 0x5c0   : > { %v2348_v23 = vadd.f32 %v2347_v3, %v2346_v63  ;;  %v2349_v5 = vpop.f32.mrb[34].mxu0 }
 0x5c1   : > { %v2350_v6 = vpop.f32.mrb[35].mxu0 }
 0x5c2   : > { %v1946_v7 = vadd.f32 %v2348_v23, %v1906_v4 }
 0x5c4   : > { %v1951_v8 = vmax.f32 %v1946_v7, 0.0 }
 0x5c6   : > { %v1952_v9 = vpack.c.bf16 %v1951_v8, %v1951_v8 }
 0x5c8   : > { %2398 = vmatmul.mubr.msk.bf16.vlgmr.msra.gmra.mrb[36].mxu0 %vm1982_vm14, %v1952_v9 }
 0x69b   : > { %v2024_v11 = vpop.f32.mrb[36].mxu0 }
 0x69c   : > { %v2025_v13 = vadd.f32 %v2024_v11, %v1960_v10  ;;  %v2399_v14 = vpop.f32.mrb[37].mxu0 }
 0x69d   : > { %v2027_v15 = vpop.f32.mrb[38].mxu0 }
 0x69e   : > { %v2400_v0 = vpop.f32.mrb[39].mxu0  ;;  %v2031_v16 = vsel %vm2030_vm15, %v2025_v13, -inf }
 0x69f   : > { %2032 = vmax.xlane.f32.xlu0 %v2031_v16 }
 0x72c   : > { %v2033_v1 = vpop.xlane.xlu0 %2032 }
 0x72d   : > { %v2034_v17 = vsub.f32 %v2025_v13, %v2033_v1 }
 0x72f   : > { %v2035_v18 = vmul.f32 1.442695, %v2034_v17 }
 0x731   : > { %2683 = vpow2.f32 %v2035_v18 }
 0x73b   : > { %v2684_v19 = vpop.eup %2683 }
 0x73c   : > { %v2037_v20 = vsel %vm2030_vm15, %v2684_v19, 0.0 }
 0x73d   : > { %2038 = vadd.xlane.f32.xlu1 %v2037_v20 }
 0x7ca   : > { %v2039_v21 = vpop.xlane.xlu1 %2038 }
 0x7cb   : > { %2685 = vlog2.f32 %v2039_v21 }
 0x7d5   : > { %v2686_v22 = vpop.eup %2685 }
 0x7d6   : > { %v2041_v2 = vmul.f32 0.6931472, %v2686_v22 }
 0x7d8   : > { %v2042_v24 = vadd.f32 %v2041_v2, %v2033_v1 }
 0x7da   : > { %v2043_v25 = vsub.f32 %v2025_v13, %v2042_v24 }
 0x7dc   : > { %2044 = vst.msk [vmem:[%s406_s22] sm:$0x1] %vm2030_vm15, %v2043_v25 }
 0x7dd   : > { %2756 = shalt.err (!%p2753_p11)
}
 0x7de   : > { %s2757_s17 = scalar_lea.hbm %s3489_s25, 16  ;;  %s2761_s15 = scalar_lea.hbm %s3543_s11, 32 }
 0x7df   : > { %p2758_p13 = scmp.ne.s32.totalorder %s3489_s25, %s2757_s17  ;;  %p2762_p6 = scmp.lt.u32.totalorder %s3489_s25, %s3543_s11 }
 0x7e0   : > { %p2763_p9 = scmp.lt.u32.totalorder %s2761_s15, %s2757_s17  ;;  %p2765_p12 = scmp.lt.u32.totalorder %s2757_s17, %s3489_s25 }
 0x7e1   : > { %p2759_p0 = pnand %p2758_p13, %p3566_p1 }
 0x7e2   : > { %p2764_p10 = por %p2763_p9, %p2762_p6 }
 0x7e3   : > { %p2760_p5 = pneg %p2759_p0 }
 0x7e4   : > { %p2766_p2 = por %p2765_p12, %p2764_p10 }
 0x7e6   : > { %p2767_p3 = pnand %p2766_p2, %p2760_p5 }
 0x7e8   : > { %2770 = shalt.err (!%p2767_p3)
}
 0x7e9   : > { %2417 = dma.vmem_to_hbm [thread:$0]  (%p3566_p1), %s3491_s19, 16, %s3489_s25, %s2046_s30  }
 0x7ea PF: > { %s3567_s22 = sld [smem:[#allocation11_spill]]  ;;  %s3568_s26 = sld [smem:[#allocation15_spill]] }
 0x7eb   : > { %p2434_p4 = scmp.ge.s32.totalorder %s2813_s20, 2 }
 0x7f0   : > { %s2070_s24 = sand.u32 1, %s3567_s22   ;;  %p3569_p7 = scmp.ne.s32.totalorder %s3568_s26, 0 }
 0x7f1   : > { %s2071_s14 = scalar_lea.sflag [#allocation4], %s2070_s24 }
 0x7f2   : > { %p2427_p8 = pnand %p2434_p4, %p3569_p7 }
 0x7f4   : > { %2796 = dma.done.wait (!%p2427_p8), %s2071_s14, 16  }
 0x7f5   : > { %2798 = vsyncadd (!%p2427_p8), %s2071_s14, 4294967280  ;;  %s3570_s20 = sld [smem:[#allocation13_spill]]  ;;  %s3571_s21 = sld [smem:[#allocation12_spill]] }
 0x7f6   : > { %s3572_s19 = sld [smem:[#allocation14_spill]]  ;;  %s3573_s17 = smov %s2805_s18 }
 0x7fb   : > { %p23_p11 = scmp.ge.s32.totalorder %s3570_s20, 4   ;;  %s3574_s18 = smov %s3571_s21 }
 0x7fd   :  { %25 = sbr.rel (!%p23_p11) target bundleno = 5 (0x5), region = 111 }
 0x804   :  { %2075 = vsyncpa [#allocation3], 1 }
 0x805   :  { %2077 = vsyncpa [#allocation3 + $0x1], 1 }
 0x806   :  { %2078 = vsyncpa [#allocation6], 1 }
 0x807   :  { %2079 = vsyncpa [#allocation4], 1 }
 0x808   :  { %2081 = vsyncpa [#allocation4 + $0x1], 1 }

</bundles_post_ra>
